<compile_context>
chip_gen: v6e
topology: v6e:2x2x1
jax: 0.10.0
libtpu: 0.0.40
codegen_flags: <defaults>
</compile_context>

<pallas_src>
import math

import jax
import jax.numpy as jnp
from jax.experimental import pallas as pl
from jax.experimental.pallas import tpu as pltpu

_BN_EPS = 1e-5


# ----------------------------- fused encoder kernel --------------------------

def _make_encoder_kernel(num_stage):
    """Whole GCN_encoder forward for one batch element per grid step.

    Ref order: x2, then 4 refs per BN-layer (att, W_kron, scale2d, shift2d)
    for gc1 and each block's gc1/gc2, then (att7, W_kron7, W_conv_kron,
    bias_row), then the output ref.
    """

    def kernel(*refs):
        x_ref = refs[0]
        out_ref = refs[-1]
        w = refs[1:-1]

        def mm(a, b):
            return jnp.dot(a, b, preferred_element_type=jnp.float32)

        def gcn_bn_tanh(h, i):
            # graph conv (node mix, then fused channel+temporal Kronecker mix)
            # followed by folded BatchNorm(eval)+bias and tanh.
            att, wk, sc, sh = w[i], w[i + 1], w[i + 2], w[i + 3]
            g = mm(mm(att[...], h), wk[...])
            return jnp.tanh(g * sc[...] + sh[...])

        a = x_ref[0]                                   # (N, Cin*L), lane-dense
        h = gcn_bn_tanh(a, 0)                          # gc1 + bn1 + tanh
        idx = 4
        for _ in range(num_stage):                     # GC_Blocks (unrolled)
            u = gcn_bn_tanh(h, idx)
            idx += 4
            h = gcn_bn_tanh(u, idx) + h                # residual after tanh
            idx += 4
        att7, wk7, wc, brow = w[idx], w[idx + 1], w[idx + 2], w[idx + 3]
        y = mm(mm(att7[...], h), wk7[...])             # gc7
        y = y + mm(a, wc[...]) + brow[...]             # + 1x1 conv(x) + biases
        out_ref[0] = y

    return kernel


# --------------------------- host-side weight folding ------------------------

def _prep_gcn_bn(gcn, bn, node_n, seq_len):
    """GraphConvolution weights -> (att, Kron(w_c, w_seq), BN scale, BN shift)."""
    C, O = gcn['w_c'].shape
    L, N = seq_len, node_n
    # W_kron[(c,t),(o,l)] = w_c[c,o] * w_seq[t,l]
    wk = jnp.einsum('co,tl->ctol', gcn['w_c'], gcn['w_seq']).reshape(C * L, O * L)
    scale = bn['gamma'] * jax.lax.rsqrt(bn['var'] + _BN_EPS)
    shift = bn['beta'] - bn['mean'] * scale
    # BN feature order is (c, n, l); rearrange to kernel layout (n, (c,l)).
    scale2d = scale.reshape(O, N, L).transpose(1, 0, 2).reshape(N, O * L)
    shift2d = shift.reshape(O, N, L).transpose(1, 0, 2).reshape(N, O * L)
    bias_row = jnp.tile(gcn['bias'], O)[None, :]       # (1, O*L): value bias[l]
    shift2d = shift2d + scale2d * bias_row             # fold gcn bias into shift
    return [gcn['att'], wk, scale2d, shift2d]


def _prep_gc7_conv(gc7, conv_w, conv_b, seq_len):
    C, O = gc7['w_c'].shape
    L = seq_len
    wk7 = jnp.einsum('co,tl->ctol', gc7['w_c'], gc7['w_seq']).reshape(C * L, O * L)
    cin = conv_w.shape[1]
    eye = jnp.eye(L, dtype=jnp.float32)
    # W_conv_kron[(c,l),(o,k)] = conv_w[o,c] * I[l,k]
    # NOTE: output axes must be ordered (c, l, o, k) so that the reshape below
    # maps rows to (c, l) and cols to (o, k).
    wc = jnp.einsum('oc,lk->clok', conv_w, eye).reshape(cin * L, O * L)
    # Combined bias row: gc7 bias (value bias[l]) + conv bias (value conv_b[o]).
    brow = (jnp.tile(gc7['bias'], O) + jnp.repeat(conv_b, L))[None, :]   # (1, O*L)
    return [gc7['att'], wk7, wc, brow]


# ------------------------------- forward wrapper ------------------------------

def gcn_encoder_forward(params, x):
    B, Cin, N, L = x.shape
    O = params['gc1']['w_c'].shape[1]
    FIN, FOUT = Cin * L, O * L
    num_stage = len(params['gcbs'])

    # Tiny host/XLA-side parameter folding (Kronecker weights, folded BN).
    ws = _prep_gcn_bn(params['gc1'], params['bn1'], N, L)
    for blk in params['gcbs']:
        ws += _prep_gcn_bn(blk['gc1'], blk['bn1'], N, L)
        ws += _prep_gcn_bn(blk['gc2'], blk['bn2'], N, L)
    ws += _prep_gc7_conv(params['gc7'], params['conv_w'], params['conv_b'], L)

    # Lane-dense activation layout: (B, N, C*L) with element [b,n,c*L+l] = x[b,c,n,l]
    x2 = jnp.transpose(x, (0, 2, 1, 3)).reshape(B, N, FIN)

    in_specs = [pl.BlockSpec((1, N, FIN), lambda b: (b, 0, 0))]
    in_specs += [pl.BlockSpec(w.shape, lambda b: (0, 0)) for w in ws]

    out = pl.pallas_call(
        _make_encoder_kernel(num_stage),
        grid=(B,),
        in_specs=in_specs,
        out_specs=pl.BlockSpec((1, N, FOUT), lambda b: (b, 0, 0)),
        out_shape=jax.ShapeDtypeStruct((B, N, FOUT), jnp.float32),
        compiler_params=pltpu.CompilerParams(
            dimension_semantics=("parallel",)),
    )(x2, *ws)

    return out.reshape(B, N, O, L).transpose(0, 2, 1, 3)


# --------------------------- deterministic init -------------------------------

def init_gcn(key, in_c, out_c, node_n, seq_len):
    stdv = 1.0 / math.sqrt(node_n)
    k1, k2, k3, k4 = jax.random.split(key, 4)
    u = lambda k, s: jax.random.uniform(k, s, jnp.float32, -stdv, stdv)
    return {'att': u(k1, (node_n, node_n)),
            'w_seq': u(k2, (seq_len, seq_len)),
            'w_c': u(k3, (in_c, out_c)),
            'bias': u(k4, (seq_len,))}


def init_bn(key, num_features):
    # Non-trivial running stats so the folded-BN path is actually exercised.
    k1, k2, k3, k4 = jax.random.split(key, 4)
    return {'gamma': 1.0 + 0.1 * jax.random.normal(k1, (num_features,), jnp.float32),
            'beta': 0.1 * jax.random.normal(k2, (num_features,), jnp.float32),
            'mean': 0.1 * jax.random.normal(k3, (num_features,), jnp.float32),
            'var': jax.random.uniform(k4, (num_features,), jnp.float32, 0.5, 1.5)}


def init_params(key, in_c, out_c, node_n, seq_len, num_stage):
    feat = out_c * node_n * seq_len
    keys = jax.random.split(key, 4 + 4 * num_stage)
    params = {'gc1': init_gcn(keys[0], in_c, out_c, node_n, seq_len),
              'bn1': init_bn(keys[1], feat),
              'gcbs': [],
              'gc7': init_gcn(keys[2], out_c, out_c, node_n, seq_len)}
    for i in range(num_stage):
        ks = keys[4 + 4 * i: 8 + 4 * i]
        params['gcbs'].append({'gc1': init_gcn(ks[0], out_c, out_c, node_n, seq_len),
                               'bn1': init_bn(ks[1], feat),
                               'gc2': init_gcn(ks[2], out_c, out_c, node_n, seq_len),
                               'bn2': init_bn(ks[3], feat)})
    kw, kb = jax.random.split(keys[3])
    bound = 1.0 / math.sqrt(in_c)
    params['conv_w'] = jax.random.uniform(kw, (out_c, in_c), jnp.float32, -bound, bound)
    params['conv_b'] = jax.random.uniform(kb, (out_c,), jnp.float32, -bound, bound)
    return params


# --------------------------- pure-JAX reference -------------------------------

def _gcn_ref(x, p):
    xp = jnp.transpose(x, (0, 3, 2, 1))                              # (B,L,N,C)
    support = jnp.einsum('nm,btmc->btnc', p['att'], xp)
    og = jnp.einsum('btnc,co->btno', support, p['w_c'])
    of = jnp.einsum('bnot,tl->bnol', jnp.transpose(og, (0, 2, 3, 1)), p['w_seq'])
    return jnp.transpose(of, (0, 2, 1, 3)) + p['bias']


def _bn_tanh_ref(y, bn):
    b = y.shape[0]
    yf = y.reshape(b, -1)
    yf = (yf - bn['mean']) * jax.lax.rsqrt(bn['var'] + _BN_EPS) * bn['gamma'] + bn['beta']
    return jnp.tanh(yf.reshape(y.shape))


def _encoder_ref(params, x):
    y = _gcn_ref(x, params['gc1'])
    y = _bn_tanh_ref(y, params['bn1'])
    for blk in params['gcbs']:
        t = _gcn_ref(y, blk['gc1'])
        t = _bn_tanh_ref(t, blk['bn1'])
        t = _gcn_ref(t, blk['gc2'])
        t = _bn_tanh_ref(t, blk['bn2']) + y
        y = t
    y = _gcn_ref(y, params['gc7'])
    conv = (jnp.einsum('oc,bcnl->bonl', params['conv_w'], x)
            + params['conv_b'][None, :, None, None])
    return y + conv


# ------------------------------------ main ------------------------------------

if __name__ == "__main__":
    B, in_c, out_c, node_n, seq_len, num_stage = 2, 4, 16, 22, 20, 1

    key = jax.random.PRNGKey(0)
    kp, kx = jax.random.split(key)
    params = init_params(kp, in_c, out_c, node_n, seq_len, num_stage)
    x = jax.random.normal(kx, (B, in_c, node_n, seq_len), jnp.float32)

    out = jax.jit(gcn_encoder_forward)(params, x)
    out = jax.block_until_ready(out)

    with jax.default_matmul_precision('highest'):
        ref = _encoder_ref(params, x)
    assert out.shape == (B, out_c, node_n, seq_len)
    max_err = float(jnp.max(jnp.abs(out - ref)))
    assert jnp.allclose(out, ref, atol=3e-3, rtol=3e-3), max_err

    print("KERNEL_OK")
</pallas_src>

<mosaic_0001>
module attributes {stable_mosaic.version = 11 : i64} {
  func.func @kernel(%arg0: i32, %arg1: memref<1x22x80xf32, #tpu.memory_space<vmem>>, %arg2: memref<22x22xf32, #tpu.memory_space<vmem>>, %arg3: memref<80x320xf32, #tpu.memory_space<vmem>>, %arg4: memref<22x320xf32, #tpu.memory_space<vmem>>, %arg5: memref<22x320xf32, #tpu.memory_space<vmem>>, %arg6: memref<22x22xf32, #tpu.memory_space<vmem>>, %arg7: memref<320x320xf32, #tpu.memory_space<vmem>>, %arg8: memref<22x320xf32, #tpu.memory_space<vmem>>, %arg9: memref<22x320xf32, #tpu.memory_space<vmem>>, %arg10: memref<22x22xf32, #tpu.memory_space<vmem>>, %arg11: memref<320x320xf32, #tpu.memory_space<vmem>>, %arg12: memref<22x320xf32, #tpu.memory_space<vmem>>, %arg13: memref<22x320xf32, #tpu.memory_space<vmem>>, %arg14: memref<22x22xf32, #tpu.memory_space<vmem>>, %arg15: memref<320x320xf32, #tpu.memory_space<vmem>>, %arg16: memref<80x320xf32, #tpu.memory_space<vmem>>, %arg17: memref<1x320xf32, #tpu.memory_space<vmem>>, %arg18: memref<1x22x320xf32, #tpu.memory_space<vmem>>) attributes {dimension_semantics = [#tpu.dimension_semantics<parallel>], iteration_bounds = array<i64: 2>, scalar_prefetch = 0 : i64, scratch_operands = 0 : i64, tpu.core_type = #tpu.core_type<tc>, window_params = [{transform_indices = @transform_0, window_bounds = array<i64: 1, 22, 80>}, {pipeline_mode = #tpu.pipeline_mode<synchronous>, transform_indices = @transform_1, window_bounds = array<i64: 22, 22>}, {pipeline_mode = #tpu.pipeline_mode<synchronous>, transform_indices = @transform_2, window_bounds = array<i64: 80, 320>}, {pipeline_mode = #tpu.pipeline_mode<synchronous>, transform_indices = @transform_3, window_bounds = array<i64: 22, 320>}, {pipeline_mode = #tpu.pipeline_mode<synchronous>, transform_indices = @transform_4, window_bounds = array<i64: 22, 320>}, {pipeline_mode = #tpu.pipeline_mode<synchronous>, transform_indices = @transform_5, window_bounds = array<i64: 22, 22>}, {pipeline_mode = #tpu.pipeline_mode<synchronous>, transform_indices = @transform_6, window_bounds = array<i64: 320, 320>}, {pipeline_mode = #tpu.pipeline_mode<synchronous>, transform_indices = @transform_7, window_bounds = array<i64: 22, 320>}, {pipeline_mode = #tpu.pipeline_mode<synchronous>, transform_indices = @transform_8, window_bounds = array<i64: 22, 320>}, {pipeline_mode = #tpu.pipeline_mode<synchronous>, transform_indices = @transform_9, window_bounds = array<i64: 22, 22>}, {pipeline_mode = #tpu.pipeline_mode<synchronous>, transform_indices = @transform_10, window_bounds = array<i64: 320, 320>}, {pipeline_mode = #tpu.pipeline_mode<synchronous>, transform_indices = @transform_11, window_bounds = array<i64: 22, 320>}, {pipeline_mode = #tpu.pipeline_mode<synchronous>, transform_indices = @transform_12, window_bounds = array<i64: 22, 320>}, {pipeline_mode = #tpu.pipeline_mode<synchronous>, transform_indices = @transform_13, window_bounds = array<i64: 22, 22>}, {pipeline_mode = #tpu.pipeline_mode<synchronous>, transform_indices = @transform_14, window_bounds = array<i64: 320, 320>}, {pipeline_mode = #tpu.pipeline_mode<synchronous>, transform_indices = @transform_15, window_bounds = array<i64: 80, 320>}, {pipeline_mode = #tpu.pipeline_mode<synchronous>, transform_indices = @transform_16, window_bounds = array<i64: 1, 320>}, {transform_indices = @transform_17, window_bounds = array<i64: 1, 22, 320>}]} {
    %c0 = arith.constant 0 : index
    %c0_0 = arith.constant 0 : index
    %c0_1 = arith.constant 0 : index
    %0 = vector.load %arg1[%c0, %c0_0, %c0_1] : memref<1x22x80xf32, #tpu.memory_space<vmem>>, vector<1x22x80xf32>
    %1 = vector.shape_cast %0 : vector<1x22x80xf32> to vector<22x80xf32>
    %c0_2 = arith.constant 0 : index
    %c0_3 = arith.constant 0 : index
    %2 = vector.load %arg2[%c0_2, %c0_3] : memref<22x22xf32, #tpu.memory_space<vmem>>, vector<22x22xf32>
    %cst = arith.constant dense<0.000000e+00> : vector<22x80xf32>
    %3 = tpu.matmul %2, %1, %cst {dimension_numbers = #tpu.dot_dimension_numbers<[1], [0], [0], [1], [0, 0, 1, 1], [], []>} : vector<22x22xf32>, vector<22x80xf32>, vector<22x80xf32> -> vector<22x80xf32>
    %c0_4 = arith.constant 0 : index
    %c0_5 = arith.constant 0 : index
    %4 = vector.load %arg3[%c0_4, %c0_5] : memref<80x320xf32, #tpu.memory_space<vmem>>, vector<80x320xf32>
    %cst_6 = arith.constant dense<0.000000e+00> : vector<22x320xf32>
    %5 = tpu.matmul %3, %4, %cst_6 {dimension_numbers = #tpu.dot_dimension_numbers<[1], [0], [0], [1], [0, 0, 1, 1], [], []>} : vector<22x80xf32>, vector<80x320xf32>, vector<22x320xf32> -> vector<22x320xf32>
    %c0_7 = arith.constant 0 : index
    %c0_8 = arith.constant 0 : index
    %6 = vector.load %arg4[%c0_7, %c0_8] : memref<22x320xf32, #tpu.memory_space<vmem>>, vector<22x320xf32>
    %7 = arith.mulf %5, %6 : vector<22x320xf32>
    %c0_9 = arith.constant 0 : index
    %c0_10 = arith.constant 0 : index
    %8 = vector.load %arg5[%c0_9, %c0_10] : memref<22x320xf32, #tpu.memory_space<vmem>>, vector<22x320xf32>
    %9 = arith.addf %7, %8 : vector<22x320xf32>
    %10 = math.tanh %9 : vector<22x320xf32>
    %c0_11 = arith.constant 0 : index
    %c0_12 = arith.constant 0 : index
    %11 = vector.load %arg6[%c0_11, %c0_12] : memref<22x22xf32, #tpu.memory_space<vmem>>, vector<22x22xf32>
    %cst_13 = arith.constant dense<0.000000e+00> : vector<22x320xf32>
    %12 = tpu.matmul %11, %10, %cst_13 {dimension_numbers = #tpu.dot_dimension_numbers<[1], [0], [0], [1], [0, 0, 1, 1], [], []>} : vector<22x22xf32>, vector<22x320xf32>, vector<22x320xf32> -> vector<22x320xf32>
    %c0_14 = arith.constant 0 : index
    %c0_15 = arith.constant 0 : index
    %13 = vector.load %arg7[%c0_14, %c0_15] : memref<320x320xf32, #tpu.memory_space<vmem>>, vector<320x320xf32>
    %cst_16 = arith.constant dense<0.000000e+00> : vector<22x320xf32>
    %14 = tpu.matmul %12, %13, %cst_16 {dimension_numbers = #tpu.dot_dimension_numbers<[1], [0], [0], [1], [0, 0, 1, 1], [], []>} : vector<22x320xf32>, vector<320x320xf32>, vector<22x320xf32> -> vector<22x320xf32>
    %c0_17 = arith.constant 0 : index
    %c0_18 = arith.constant 0 : index
    %15 = vector.load %arg8[%c0_17, %c0_18] : memref<22x320xf32, #tpu.memory_space<vmem>>, vector<22x320xf32>
    %16 = arith.mulf %14, %15 : vector<22x320xf32>
    %c0_19 = arith.constant 0 : index
    %c0_20 = arith.constant 0 : index
    %17 = vector.load %arg9[%c0_19, %c0_20] : memref<22x320xf32, #tpu.memory_space<vmem>>, vector<22x320xf32>
    %18 = arith.addf %16, %17 : vector<22x320xf32>
    %19 = math.tanh %18 : vector<22x320xf32>
    %c0_21 = arith.constant 0 : index
    %c0_22 = arith.constant 0 : index
    %20 = vector.load %arg10[%c0_21, %c0_22] : memref<22x22xf32, #tpu.memory_space<vmem>>, vector<22x22xf32>
    %cst_23 = arith.constant dense<0.000000e+00> : vector<22x320xf32>
    %21 = tpu.matmul %20, %19, %cst_23 {dimension_numbers = #tpu.dot_dimension_numbers<[1], [0], [0], [1], [0, 0, 1, 1], [], []>} : vector<22x22xf32>, vector<22x320xf32>, vector<22x320xf32> -> vector<22x320xf32>
    %c0_24 = arith.constant 0 : index
    %c0_25 = arith.constant 0 : index
    %22 = vector.load %arg11[%c0_24, %c0_25] : memref<320x320xf32, #tpu.memory_space<vmem>>, vector<320x320xf32>
    %cst_26 = arith.constant dense<0.000000e+00> : vector<22x320xf32>
    %23 = tpu.matmul %21, %22, %cst_26 {dimension_numbers = #tpu.dot_dimension_numbers<[1], [0], [0], [1], [0, 0, 1, 1], [], []>} : vector<22x320xf32>, vector<320x320xf32>, vector<22x320xf32> -> vector<22x320xf32>
    %c0_27 = arith.constant 0 : index
    %c0_28 = arith.constant 0 : index
    %24 = vector.load %arg12[%c0_27, %c0_28] : memref<22x320xf32, #tpu.memory_space<vmem>>, vector<22x320xf32>
    %25 = arith.mulf %23, %24 : vector<22x320xf32>
    %c0_29 = arith.constant 0 : index
    %c0_30 = arith.constant 0 : index
    %26 = vector.load %arg13[%c0_29, %c0_30] : memref<22x320xf32, #tpu.memory_space<vmem>>, vector<22x320xf32>
    %27 = arith.addf %25, %26 : vector<22x320xf32>
    %28 = math.tanh %27 : vector<22x320xf32>
    %29 = arith.addf %28, %10 : vector<22x320xf32>
    %c0_31 = arith.constant 0 : index
    %c0_32 = arith.constant 0 : index
    %30 = vector.load %arg14[%c0_31, %c0_32] : memref<22x22xf32, #tpu.memory_space<vmem>>, vector<22x22xf32>
    %cst_33 = arith.constant dense<0.000000e+00> : vector<22x320xf32>
    %31 = tpu.matmul %30, %29, %cst_33 {dimension_numbers = #tpu.dot_dimension_numbers<[1], [0], [0], [1], [0, 0, 1, 1], [], []>} : vector<22x22xf32>, vector<22x320xf32>, vector<22x320xf32> -> vector<22x320xf32>
    %c0_34 = arith.constant 0 : index
    %c0_35 = arith.constant 0 : index
    %32 = vector.load %arg15[%c0_34, %c0_35] : memref<320x320xf32, #tpu.memory_space<vmem>>, vector<320x320xf32>
    %cst_36 = arith.constant dense<0.000000e+00> : vector<22x320xf32>
    %33 = tpu.matmul %31, %32, %cst_36 {dimension_numbers = #tpu.dot_dimension_numbers<[1], [0], [0], [1], [0, 0, 1, 1], [], []>} : vector<22x320xf32>, vector<320x320xf32>, vector<22x320xf32> -> vector<22x320xf32>
    %c0_37 = arith.constant 0 : index
    %c0_38 = arith.constant 0 : index
    %34 = vector.load %arg16[%c0_37, %c0_38] : memref<80x320xf32, #tpu.memory_space<vmem>>, vector<80x320xf32>
    %cst_39 = arith.constant dense<0.000000e+00> : vector<22x320xf32>
    %35 = tpu.matmul %1, %34, %cst_39 {dimension_numbers = #tpu.dot_dimension_numbers<[1], [0], [0], [1], [0, 0, 1, 1], [], []>} : vector<22x80xf32>, vector<80x320xf32>, vector<22x320xf32> -> vector<22x320xf32>
    %36 = arith.addf %33, %35 : vector<22x320xf32>
    %c0_40 = arith.constant 0 : index
    %c0_41 = arith.constant 0 : index
    %37 = vector.load %arg17[%c0_40, %c0_41] : memref<1x320xf32, #tpu.memory_space<vmem>>, vector<1x320xf32>
    %38 = vector.broadcast %37 : vector<1x320xf32> to vector<22x320xf32>
    %39 = arith.addf %36, %38 : vector<22x320xf32>
    %c0_42 = arith.constant 0 : index
    %c0_43 = arith.constant 0 : index
    %c0_44 = arith.constant 0 : index
    %40 = vector.load %arg18[%c0_42, %c0_43, %c0_44] : memref<1x22x320xf32, #tpu.memory_space<vmem>>, vector<1x22x320xf32>
    %41 = vector.shape_cast %40 : vector<1x22x320xf32> to vector<22x320xf32>
    %42 = vector.shape_cast %39 : vector<22x320xf32> to vector<1x22x320xf32>
    tpu.vector_store %arg18[%c0_42, %c0_43, %c0_44], %42 {strides = array<i32>} : memref<1x22x320xf32, #tpu.memory_space<vmem>>, vector<1x22x320xf32>,
    return
  }
  func.func @transform_0(%arg0: i32) -> (i32, i32, i32) {
    %c0_i32 = arith.constant 0 : i32
    %c0_i32_0 = arith.constant 0 : i32
    %c0_i32_1 = arith.constant 0 : i32
    return %arg0, %c0_i32, %c0_i32_0 : i32, i32, i32
  }
  func.func @transform_1(%arg0: i32) -> (i32, i32) {
    %c0_i32 = arith.constant 0 : i32
    %c0_i32_0 = arith.constant 0 : i32
    %c0_i32_1 = arith.constant 0 : i32
    return %c0_i32, %c0_i32_0 : i32, i32
  }
  func.func @transform_2(%arg0: i32) -> (i32, i32) {
    %c0_i32 = arith.constant 0 : i32
    %c0_i32_0 = arith.constant 0 : i32
    %c0_i32_1 = arith.constant 0 : i32
    return %c0_i32, %c0_i32_0 : i32, i32
  }
  func.func @transform_3(%arg0: i32) -> (i32, i32) {
    %c0_i32 = arith.constant 0 : i32
    %c0_i32_0 = arith.constant 0 : i32
    %c0_i32_1 = arith.constant 0 : i32
    return %c0_i32, %c0_i32_0 : i32, i32
  }
  func.func @transform_4(%arg0: i32) -> (i32, i32) {
    %c0_i32 = arith.constant 0 : i32
    %c0_i32_0 = arith.constant 0 : i32
    %c0_i32_1 = arith.constant 0 : i32
    return %c0_i32, %c0_i32_0 : i32, i32
  }
  func.func @transform_5(%arg0: i32) -> (i32, i32) {
    %c0_i32 = arith.constant 0 : i32
    %c0_i32_0 = arith.constant 0 : i32
    %c0_i32_1 = arith.constant 0 : i32
    return %c0_i32, %c0_i32_0 : i32, i32
  }
  func.func @transform_6(%arg0: i32) -> (i32, i32) {
    %c0_i32 = arith.constant 0 : i32
    %c0_i32_0 = arith.constant 0 : i32
    %c0_i32_1 = arith.constant 0 : i32
    return %c0_i32, %c0_i32_0 : i32, i32
  }
  func.func @transform_7(%arg0: i32) -> (i32, i32) {
    %c0_i32 = arith.constant 0 : i32
    %c0_i32_0 = arith.constant 0 : i32
    %c0_i32_1 = arith.constant 0 : i32
    return %c0_i32, %c0_i32_0 : i32, i32
  }
  func.func @transform_8(%arg0: i32) -> (i32, i32) {
    %c0_i32 = arith.constant 0 : i32
    %c0_i32_0 = arith.constant 0 : i32
    %c0_i32_1 = arith.constant 0 : i32
    return %c0_i32, %c0_i32_0 : i32, i32
  }
  func.func @transform_9(%arg0: i32) -> (i32, i32) {
    %c0_i32 = arith.constant 0 : i32
    %c0_i32_0 = arith.constant 0 : i32
    %c0_i32_1 = arith.constant 0 : i32
    return %c0_i32, %c0_i32_0 : i32, i32
  }
  func.func @transform_10(%arg0: i32) -> (i32, i32) {
    %c0_i32 = arith.constant 0 : i32
    %c0_i32_0 = arith.constant 0 : i32
    %c0_i32_1 = arith.constant 0 : i32
    return %c0_i32, %c0_i32_0 : i32, i32
  }
  func.func @transform_11(%arg0: i32) -> (i32, i32) {
    %c0_i32 = arith.constant 0 : i32
    %c0_i32_0 = arith.constant 0 : i32
    %c0_i32_1 = arith.constant 0 : i32
    return %c0_i32, %c0_i32_0 : i32, i32
  }
  func.func @transform_12(%arg0: i32) -> (i32, i32) {
    %c0_i32 = arith.constant 0 : i32
    %c0_i32_0 = arith.constant 0 : i32
    %c0_i32_1 = arith.constant 0 : i32
    return %c0_i32, %c0_i32_0 : i32, i32
  }
  func.func @transform_13(%arg0: i32) -> (i32, i32) {
    %c0_i32 = arith.constant 0 : i32
    %c0_i32_0 = arith.constant 0 : i32
    %c0_i32_1 = arith.constant 0 : i32
    return %c0_i32, %c0_i32_0 : i32, i32
  }
  func.func @transform_14(%arg0: i32) -> (i32, i32) {
    %c0_i32 = arith.constant 0 : i32
    %c0_i32_0 = arith.constant 0 : i32
    %c0_i32_1 = arith.constant 0 : i32
    return %c0_i32, %c0_i32_0 : i32, i32
  }
  func.func @transform_15(%arg0: i32) -> (i32, i32) {
    %c0_i32 = arith.constant 0 : i32
    %c0_i32_0 = arith.constant 0 : i32
    %c0_i32_1 = arith.constant 0 : i32
    return %c0_i32, %c0_i32_0 : i32, i32
  }
  func.func @transform_16(%arg0: i32) -> (i32, i32) {
    %c0_i32 = arith.constant 0 : i32
    %c0_i32_0 = arith.constant 0 : i32
    %c0_i32_1 = arith.constant 0 : i32
    return %c0_i32, %c0_i32_0 : i32, i32
  }
  func.func @transform_17(%arg0: i32) -> (i32, i32, i32) {
    %c0_i32 = arith.constant 0 : i32
    %c0_i32_0 = arith.constant 0 : i32
    %c0_i32_1 = arith.constant 0 : i32
    return %arg0, %c0_i32, %c0_i32_0 : i32, i32, i32
  }
}

</mosaic_0001>

<bundles_post_ra>
// kernel: mul.27
= control target key start
LH: loop header
LB: loop body
LE: loop exit
PB: predicated region body
PF: predicated region fallthrough
CT: control target
= control target key end

     0   :  { %vm9_vm0 = vcmask 64512   ;;  %vm22_vm1 = vcmask 130048   ;;  %s158_s14 = smov 120   ;;  %s159_s15 = smov 100   ;;  %vm3_vm2 = vcmask 162816   ;;  %vm13_vm3 = vcmask 97280   ;;  %s240_s0 = inlined_call_operand.vmem [shape: f32[16,20], index: 0, kind: input, shape index: {}]   ;;  %s241_s1 = inlined_call_operand.vmem [shape: f32[320], index: 1, kind: output, shape index: {}]  }
   0x1   :  { %v126_v0 = vld [vmem:[%s240_s0 + $0x6] sm:$0x1]   ;;  %v130_v3 = vld [vmem:[%s240_s0 + $0x5] sm:$0x1]   ;;  %v128_v4 = vld [vmem:[%s240_s0 + $0xc] sm:$0x1]  }
   0x2   :  { %v127_v1 = vld [vmem:[%s240_s0 + $0x6] sm:$0x1]   ;;  %34 = vrot.lane.b32.xlu1 %v130_v3, %s159_s15  ;;  %v129_v5 = vld [vmem:[%s240_s0 + $0xc] sm:$0x1]   ;;  %v131_v7 = vld [vmem:[%s240_s0 + $0xb] sm:$0x1]  }
   0x3   :  { %v10_v2 = vsel %vm9_vm0, %v127_v1, %v126_v0  ;;  %v23_v6 = vsel %vm22_vm1, %v129_v5, %v128_v4  ;;  %s160_s20 = smov 112   ;;  %s161_s21 = smov 92   ;;  %v132_v8 = vld [vmem:[%s240_s0 + $0x4] sm:$0x1]   ;;  %v133_v9 = vld [vmem:[%s240_s0 + $0xa] sm:$0x1]  }
   0x4   :  { %11 = vrot.lane.b32.xlu0 %v10_v2, %s158_s14  ;;  %v2_v10 = vld [vmem:[%s240_s0] sm:$0x1]   ;;  %s162_s28 = smov 80   ;;  %s163_s29 = smov 72   ;;  %v134_v11 = vld [vmem:[%s240_s0 + $0x3] sm:$0x1]  }
   0x5   :  { %4 = vst.msk [vmem:[#allocation0] sm:$0x1] %vm3_vm2, %v2_v10   ;;  %v135_v12 = vld [vmem:[%s240_s0 + $0x9] sm:$0x1]   ;;  %s164_s5 = smov 60   ;;  %s165_s6 = smov 52  }
   0x6   :  { %40 = vrot.lane.b32.xlu1 %v131_v7, %s161_s21  ;;  %v136_v13 = vld [vmem:[%s240_s0 + $0xf] sm:$0x1]   ;;  %v137_v14 = vld [vmem:[%s240_s0 + $0x2] sm:$0x1]   ;;  %s166_s11 = smov 44   ;;  %s167_s12 = smov 40  }
   0x7   :  { %v138_v15 = vld [vmem:[%s240_s0 + $0x8] sm:$0x1]   ;;  %v139_v16 = vld [vmem:[%s240_s0 + $0xe] sm:$0x1]   ;;  %s168_s17 = smov 32   ;;  %s169_s18 = smov 24  }
   0x8   :  { %24 = vrot.lane.b32.xlu0 %v23_v6, %s160_s20  ;;  %v140_v17 = vld [vmem:[%s240_s0 + $0x1] sm:$0x1]   ;;  %v141_v18 = vld [vmem:[%s240_s0 + $0x7] sm:$0x1]   ;;  %s170_s23 = smov 20   ;;  %s171_s24 = smov 12  }
   0x9   :  { %v142_v19 = vld [vmem:[%s240_s0 + $0xd] sm:$0x1]   ;;  %s172_s0 = smov 4   ;;  %vm16_vm4 = vcmask 1048512   ;;  %vm36_vm5 = vcmask 982816   ;;  %vm26_vm6 = vcmask 31744  }
   0xa   :  { %53 = vrot.lane.b32.xlu1 %v133_v9, %s163_s29  ;;  %vm29_vm7 = vcmask 1048448   ;;  %vm42_vm8 = vcmask 917216   ;;  %vm49_vm9 = vcmask 818816   ;;  %vm55_vm10 = vcmask 753216  }
   0xb   :  { %vm62_vm11 = vcmask 654816   ;;  %vm68_vm12 = vcmask 589216   ;;  %vm75_vm13 = vcmask 523616   ;;  %vm82_vm14 = vcmask 490816  }
   0xc   :  { %47 = vrot.lane.b32.xlu0 %v132_v8, %s162_s28  ;;  %vm88_vm15 = vcmask 425216   ;;  %vm95_vm0 = vcmask 359616   ;;  %vm102_vm1 = vcmask 326816   ;;  %vm108_vm2 = vcmask 261216  }
   0xe   :  { %66 = vrot.lane.b32.xlu1 %v135_v12, %s165_s6 }
  0x10   :  { %60 = vrot.lane.b32.xlu0 %v134_v11, %s164_s5 }
  0x12   :  { %80 = vrot.lane.b32.xlu1 %v137_v14, %s167_s12 }
  0x14   :  { %73 = vrot.lane.b32.xlu0 %v136_v13, %s166_s11 }
  0x16   :  { %93 = vrot.lane.b32.xlu1 %v139_v16, %s169_s18 }
  0x18   :  { %86 = vrot.lane.b32.xlu0 %v138_v15, %s168_s17 }
  0x1a   :  { %106 = vrot.lane.b32.xlu1 %v141_v18, %s171_s24 }
  0x1c   :  { %100 = vrot.lane.b32.xlu0 %v140_v17, %s170_s23 }
  0x20   :  { %113 = vrot.lane.b32.xlu0 %v142_v19, %s172_s0 }
  0x74   :  { %v35_v21 = vpop.permute.xlu1 %34  }
  0x76   :  { %v12_v20 = vpop.permute.xlu0 %11  }
  0x77   :  { %15 = vst.msk [vmem:[#allocation0 + $0x1] sm:$0x1] %vm13_vm3, %v12_v20   ;;  %vm115_vm3 = vcmask 195616  }
  0x78   :  { %17 = vst.msk [vmem:[#allocation0] sm:$0x1] %vm16_vm4, %v12_v20   ;;  %v41_v23 = vpop.permute.xlu1 %40  }
  0x79   :  { %37 = vst.msk [vmem:[#allocation0] sm:$0x1] %vm36_vm5, %v35_v21  }
  0x7a   :  { %v25_v22 = vpop.permute.xlu0 %24  }
  0x7b   :  { %28 = vst.msk [vmem:[#allocation0 + $0x2] sm:$0x1] %vm26_vm6, %v25_v22  }
  0x7c   :  { %31 = vst.msk [vmem:[#allocation0 + $0x1] sm:$0x1] %vm29_vm7, %v25_v22   ;;  %v54_v25 = vpop.permute.xlu1 %53  }
  0x7d   :  { %44 = vst.msk [vmem:[#allocation0 + $0x1] sm:$0x1] %vm42_vm8, %v41_v23  }
  0x7e   :  { %v48_v24 = vpop.permute.xlu0 %47   ;;  %57 = vst.msk [vmem:[#allocation0 + $0x1] sm:$0x1] %vm55_vm10, %v54_v25  }
  0x7f   :  { %50 = vst.msk [vmem:[#allocation0] sm:$0x1] %vm49_vm9, %v48_v24  }
  0x80   :  { %v67_v27 = vpop.permute.xlu1 %66  }
  0x81   :  { %70 = vst.msk [vmem:[#allocation0 + $0x1] sm:$0x1] %vm68_vm12, %v67_v27  }
  0x82   :  { %v61_v26 = vpop.permute.xlu0 %60  }
  0x83   :  { %63 = vst.msk [vmem:[#allocation0] sm:$0x1] %vm62_vm11, %v61_v26  }
  0x84   :  { %v81_v29 = vpop.permute.xlu1 %80  }
  0x85   :  { %83 = vst.msk [vmem:[#allocation0] sm:$0x1] %vm82_vm14, %v81_v29  }
  0x86   :  { %v74_v28 = vpop.permute.xlu0 %73  }
  0x87   :  { %77 = vst.msk [vmem:[#allocation0 + $0x2] sm:$0x1] %vm75_vm13, %v74_v28  }
  0x88   :  { %v94_v31 = vpop.permute.xlu1 %93  }
  0x89   :  { %97 = vst.msk [vmem:[#allocation0 + $0x2] sm:$0x1] %vm95_vm0, %v94_v31  }
  0x8a   :  { %v87_v30 = vpop.permute.xlu0 %86  }
  0x8b   :  { %90 = vst.msk [vmem:[#allocation0 + $0x1] sm:$0x1] %vm88_vm15, %v87_v30  }
  0x8c   :  { %v107_v33 = vpop.permute.xlu1 %106  }
  0x8d   :  { %110 = vst.msk [vmem:[#allocation0 + $0x1] sm:$0x1] %vm108_vm2, %v107_v33  }
  0x8e   :  { %v101_v32 = vpop.permute.xlu0 %100  }
  0x8f   :  { %103 = vst.msk [vmem:[#allocation0] sm:$0x1] %vm102_vm1, %v101_v32  }
  0x92   :  { %v114_v34 = vpop.permute.xlu0 %113  }
  0x93   :  { %117 = vst.msk [vmem:[#allocation0 + $0x2] sm:$0x1] %vm115_vm3, %v114_v34  }
  0x9a   :  { %v122_v35 = vld [vmem:[#allocation0] sm:$0xf] }
  0x9b   :  { %125 = vst [vmem:[%s241_s1] sm:$0xf] %v122_v35 }

// kernel: tile.28
= control target key start
LH: loop header
LB: loop body
LE: loop exit
PB: predicated region body
PF: predicated region fallthrough
CT: control target
= control target key end

     0   :  { %s28_s0 = inlined_call_operand.vmem [shape: f32[20], index: 0, kind: input, shape index: {}]   ;;  %s29_s1 = inlined_call_operand.vmem [shape: f32[16,20], index: 1, kind: output, shape index: {}]  }
   0x1   :  { %v4_v0 = vld [vmem:[%s28_s0] ss:$0 sm:$0xff] }
   0x2   :  { %5 = vst [vmem:[%s29_s1] sm:$0xff] %v4_v0  ;;  %8 = vst [vmem:[%s29_s1 + $0x8] sm:$0xff] %v4_v0 }

// kernel: gcn_encoder_forward.1
= control target key start
LH: loop header
LB: loop body
LE: loop exit
PB: predicated region body
PF: predicated region fallthrough
CT: control target
= control target key end

     0   :  { %s3844_s24 = smov 0   ;;  %s5715_s0 = inlined_call_operand.vmem [shape: f32[2,22,80], index: 0, kind: input, shape index: {}]   ;;  %s5716_s1 = inlined_call_operand.vmem [shape: f32[22,22], index: 1, kind: input, shape index: {}]   ;;  %s5717_s2 = inlined_call_operand.vmem [shape: f32[80,320], index: 2, kind: input, shape index: {}]   ;;  %s5718_s3 = inlined_call_operand.vmem [shape: f32[22,320], index: 3, kind: input, shape index: {}]   ;;  %s5719_s4 = inlined_call_operand.vmem [shape: f32[22,320], index: 4, kind: input, shape index: {}]   ;;  %s5720_s5 = inlined_call_operand.vmem [shape: f32[22,22], index: 5, kind: input, shape index: {}]   ;;  %s5721_s6 = inlined_call_operand.vmem [shape: f32[320,320], index: 6, kind: input, shape index: {}]   ;;  %s5722_s7 = inlined_call_operand.vmem [shape: f32[22,320], index: 7, kind: input, shape index: {}]   ;;  %s5723_s8 = inlined_call_operand.vmem [shape: f32[22,320], index: 8, kind: input, shape index: {}]   ;;  %s5724_s9 = inlined_call_operand.vmem [shape: f32[22,22], index: 9, kind: input, shape index: {}]   ;;  %s5725_s10 = inlined_call_operand.vmem [shape: f32[320,320], index: 10, kind: input, shape index: {}]   ;;  %s5726_s11 = inlined_call_operand.vmem [shape: f32[22,320], index: 11, kind: input, shape index: {}]   ;;  %s5727_s12 = inlined_call_operand.vmem [shape: f32[22,320], index: 12, kind: input, shape index: {}]   ;;  %s5728_s13 = inlined_call_operand.vmem [shape: f32[22,22], index: 13, kind: input, shape index: {}]   ;;  %s5729_s14 = inlined_call_operand.vmem [shape: f32[320,320], index: 14, kind: input, shape index: {}]   ;;  %s5730_s15 = inlined_call_operand.vmem [shape: f32[80,320], index: 15, kind: input, shape index: {}]   ;;  %s5731_s16 = inlined_call_operand.vmem [shape: f32[1,320], index: 16, kind: input, shape index: {}]   ;;  %s5732_s17 = inlined_call_operand.vmem [shape: f32[2,22,320], index: 17, kind: output, shape index: {}]  }
   0x1   :  { %5734 = sst [smem:[#allocation2_spill]] %s5715_s0 }
   0x2   :  { %5735 = sst [smem:[#allocation3_spill]] %s5716_s1 }
   0x3 LB: > { %s3206_s25 = sadd.s32 4294967295, %s3750_s24   ;;  %p3210_p0 = scmp.ge.s32.totalorder %s3750_s24, 1  ;;  %s3750_s24 = sphi %s3844_s24, %s27_s24  }
   0x4   : > { %p487_p1 = scmp.lt.s32.totalorder %s3750_s24, 3 }
   0x6   : > { %p488_p2 = pnand %p3210_p0, %p487_p1 }
   0x7   : > { %p539_p3 = scmp.lt.s32.totalorder (!%p488_p2), %s3206_s25, 1  ;;  %s5736_s0 = sld [smem:[#allocation2_spill]] (!%p488_p2) }
   0x8   : > { %491 = sbr.rel (%p488_p2) target bundleno = 1826 (0x722), region = 88  ;;  %s5737_s29 = sld [smem:[#allocation3_spill]] (!%p488_p2) }
   0xd   : > { %v3752_v0 = vmov 0.0   ;;  %vm3753_vm0 = vmmov 0   ;;  %v677_v1 = vld [vmem:[%s5717_s2 + $0xe0] sm:$0xff]  ;;  %s5739_s25 = smov (!%p539_p3, %s3206_s25), 1  ;;  %v676_v2 = vld [vmem:[%s5717_s2 + $0xd8] sm:$0xff]  ;;  %v674_v3 = vld [vmem:[%s5717_s2 + $0xc8] sm:$0xff] }
   0xe   : > { %3482 = vmatprep.subr.mxu0 %v3752_v0  ;;  %3488 = vmatprep.mubr.msk.f32.mxu0 %vm3753_vm0, %v3752_v0  ;;  %v673_v4 = vld [vmem:[%s5717_s2 + $0xc0] sm:$0xff]  ;;  %v671_v5 = vld [vmem:[%s5717_s2 + $0xb0] sm:$0xff]  ;;  %s3675_s21 = smul.u32 24, %s5739_s25  ;;  %v670_v6 = vld [vmem:[%s5717_s2 + $0xa8] sm:$0xff]  ;;  %vm565_vm1 = vcmask 1045504   ;;  %vm555_vm2 = vcmask 179200  }
   0xf   : > { %701 = vmatprep.subr.mxu1 %v677_v1  ;;  %753 = vmatprep.mubr.f32.mxu1 %v3752_v0  ;;  %v668_v7 = vld [vmem:[%s5717_s2 + $0x98] sm:$0xff]  ;;  %v667_v8 = vld [vmem:[%s5717_s2 + $0x90] sm:$0xff]  ;;  %v665_v11 = vld [vmem:[%s5717_s2 + $0x80] sm:$0xff]  ;;  %vm679_vm3 = vcmask 654336   ;;  %vm1201_vm4 = vcmask 523264   ;;  %s3676_s22 = smul.u32 72, %s5739_s25 }
  0x10   : > { %702 = vmatpush1.msra.mxu1 %v676_v2  ;;  %s3883_s30 = scalar_lea.vmem %s5736_s0, %s3675_s21  ;;  %v664_v12 = vld [vmem:[%s5717_s2 + $0x78] sm:$0xff]  ;;  %v662_v14 = vld [vmem:[%s5717_s2 + $0x68] sm:$0xff]  ;;  %v552_v15 = vld [vmem:[%s5737_s29] sm:$0xff]  ;;  %vm3149_vm5 = vcmask 521216  }
  0x11   : > { %703 = vmatprep.subr.mxu1 %v674_v3  ;;  %v551_v9 = vld [vmem:[%s3883_s30 + $0x10] sm:$0x3f]  ;;  %v550_v10 = vld [vmem:[%s3883_s30 + $0x8] sm:$0xff]  ;;  %v549_v13 = vld [vmem:[%s3883_s30] sm:$0xff]  ;;  %s5696_s27 = scalar_lea.vmem %s5732_s17, %s3676_s22 }
  0x12   : > { %704 = vmatpush1.msra.mxu1 %v673_v4  ;;  %3483 = vmatpush3.msk.msra.mxu0 %vm565_vm1, %v551_v9  ;;  %v678_v16 = vld [vmem:[%s5717_s2 + $0xe8] sm:$0xff]  ;;  %v661_v17 = vld [vmem:[%s5717_s2 + $0x60] sm:$0xff]  ;;  %v675_v18 = vld [vmem:[%s5717_s2 + $0xd0] sm:$0xff] }
  0x13   : > { %705 = vmatprep.subr.mxu1 %v671_v5  ;;  %3484 = vmatprep.subr.mxu0 %v3752_v0  ;;  %v659_v19 = vld [vmem:[%s5717_s2 + $0x50] sm:$0xff]  ;;  %v553_v20 = vld [vmem:[%s5737_s29 + $0x8] sm:$0xff]  ;;  %v672_v21 = vld [vmem:[%s5717_s2 + $0xb8] sm:$0xff] }
  0x14   : > { %706 = vmatpush1.msra.mxu1 %v670_v6  ;;  %3485 = vmatpush3.msra.mxu0 %v550_v10  ;;  %v658_v22 = vld [vmem:[%s5717_s2 + $0x48] sm:$0xff]  ;;  %v669_v23 = vld [vmem:[%s5717_s2 + $0xa0] sm:$0xff]  ;;  %v656_v24 = vld [vmem:[%s5717_s2 + $0x38] sm:$0xff] }
  0x15   : > { %707 = vmatprep.subr.mxu1 %v668_v7  ;;  %3486 = vmatprep.subr.mxu0 %v3752_v0  ;;  %v554_v25 = vld [vmem:[%s5737_s29 + $0x10] sm:$0x3f]  ;;  %v666_v26 = vld [vmem:[%s5717_s2 + $0x88] sm:$0xff]  ;;  %v653_v28 = vld [vmem:[%s5717_s2 + $0x20] sm:$0xff] }
  0x16   : > { %708 = vmatpush1.msra.mxu1 %v667_v8  ;;  %3487 = vmatpush3.msra.mxu0 %v549_v13  ;;  %v655_v27 = vld [vmem:[%s5717_s2 + $0x30] sm:$0xff]  ;;  %v652_v30 = vld [vmem:[%s5717_s2 + $0x18] sm:$0xff]  ;;  %v650_v31 = vld [vmem:[%s5717_s2 + $0x8] sm:$0xff] }
  0x17   : > { %709 = vmatprep.subr.mxu1 %v665_v11  ;;  %3489 = vmatmul.mubr.msk.f32.vlgmr.msra.gmra.mxu0 %vm555_vm2, %v552_v15  ;;  %v663_v29 = vld [vmem:[%s5717_s2 + $0x70] sm:$0xff]  ;;  %v660_v32 = vld [vmem:[%s5717_s2 + $0x58] sm:$0xff]  ;;  %v657_v33 = vld [vmem:[%s5717_s2 + $0x40] sm:$0xff] }
  0x18   : > { %710 = vmatpush1.msra.mxu1 %v664_v12  ;;  %3497 = vmatprep.subr.mxu0 %v3752_v0  ;;  %v654_v34 = vld [vmem:[%s5717_s2 + $0x28] sm:$0xff]  ;;  %v649_v35 = vld [vmem:[%s5717_s2] sm:$0xff]  ;;  %v651_v36 = vld [vmem:[%s5717_s2 + $0x10] sm:$0xff] }
  0x19   : > { %711 = vmatprep.subr.mxu1 %v662_v14  ;;  %3491 = vmatprep.mubr.msk.f32.mxu0 %vm3753_vm0, %v3752_v0  ;;  %v854_v45 = vld [vmem:[%s5718_s3 + $0x10] sm:$0xff]  ;;  %v857_v48 = vld [vmem:[%s5718_s3 + $0x28] sm:$0xff]  ;;  %v856_v56 = vld [vmem:[%s5718_s3 + $0x20] sm:$0xff] }
  0x1a   : > { %3498 = vmatpush3.msra.mxu0 %v678_v16  ;;  %712 = vmatpush1.msra.mxu1 %v661_v17  ;;  %v872_v52 = vld [vmem:[%s5719_s4 + $0x10] sm:$0xff]  ;;  %v875_v54 = vld [vmem:[%s5719_s4 + $0x28] sm:$0xff]  ;;  %v860_v59 = vld [vmem:[%s5718_s3 + $0x40] sm:$0x3f] }
  0x1b   : > { %3499 = vmatprep.subr.mxu0 %v3752_v0  ;;  %713 = vmatprep.subr.mxu1 %v659_v19  ;;  %v858_v58 = vld [vmem:[%s5718_s3 + $0x30] sm:$0x3f]  ;;  %v855_v60 = vld [vmem:[%s5718_s3 + $0x18] sm:$0xff]  ;;  %v853_v62 = vld [vmem:[%s5718_s3 + $0x8] sm:$0xff] }
  0x1c   : > { %3500 = vmatpush3.msra.mxu0 %v675_v18  ;;  %714 = vmatpush1.msra.mxu1 %v658_v22  ;;  %v878_v2 = vld [vmem:[%s5719_s4 + $0x40] sm:$0x3f]  ;;  %v859_v3 = vld [vmem:[%s5718_s3 + $0x38] sm:$0x3f]  ;;  %v876_v8 = vld [vmem:[%s5719_s4 + $0x30] sm:$0x3f] }
  0x1d   : > { %3492 = vmatmul.mubr.msk.f32.gmra.mxu0 %vm555_vm2, %v553_v20  ;;  %3501 = vmatprep.subr.mxu0 %v3752_v0  ;;  %v852_v4 = vld [vmem:[%s5718_s3] sm:$0xff]  ;;  %v877_v13 = vld [vmem:[%s5719_s4 + $0x38] sm:$0x3f]  ;;  %v871_v20 = vld [vmem:[%s5719_s4 + $0x8] sm:$0xff] }
  0x1e   : > { %3494 = vmatprep.mubr.msk.f32.mxu0 %vm3753_vm0, %v3752_v0  ;;  %3502 = vmatpush3.msra.mxu0 %v672_v21  ;;  %v874_v11 = vld [vmem:[%s5719_s4 + $0x20] sm:$0xff]  ;;  %v873_v16 = vld [vmem:[%s5719_s4 + $0x18] sm:$0xff] }
  0x1f   : > { %3503 = vmatprep.subr.mxu0 %v3752_v0  ;;  %715 = vmatprep.subr.mxu1 %v656_v24  ;;  %v870_v22 = vld [vmem:[%s5719_s4] sm:$0xff] }
  0x20   : > { %3504 = vmatpush3.msra.mxu0 %v669_v23  ;;  %716 = vmatpush1.msra.mxu1 %v655_v27 }
  0x21   : > { %3495 = vmatmul.mubr.msk.f32.gmra.mxu0 %vm555_vm2, %v554_v25  ;;  %3505 = vmatprep.subr.mxu0 %v3752_v0 }
  0x22   : > { %3506 = vmatpush3.msra.mxu0 %v666_v26  ;;  %717 = vmatprep.subr.mxu1 %v653_v28 }
  0x23   : > { %3507 = vmatprep.subr.mxu0 %v3752_v0  ;;  %718 = vmatpush1.msra.mxu1 %v652_v30 }
  0x24   : > { %3508 = vmatpush3.msra.mxu0 %v663_v29  ;;  %719 = vmatprep.subr.mxu1 %v650_v31 }
  0x25   : > { %3509 = vmatprep.subr.mxu0 %v3752_v0  ;;  %3517 = vmatprep.mubr.msk.f32.mxu0 %vm3753_vm0, %v3752_v0 }
  0x26   : > { %3510 = vmatpush3.msra.mxu0 %v660_v32  ;;  %720 = vmatpush1.msra.mxu1 %v649_v35 }
  0x27   : > { %3511 = vmatprep.subr.mxu0 %v3752_v0 }
  0x28   : > { %3512 = vmatpush3.msra.mxu0 %v657_v33 }
  0x29   : > { %3513 = vmatprep.subr.mxu0 %v3752_v0 }
  0x2a   : > { %3514 = vmatpush3.msra.mxu0 %v654_v34  ;;  %v897_v34 = vld [vmem:[%s5720_s5] sm:$0xff] }
  0x2b   : > { %3515 = vmatprep.subr.mxu0 %v3752_v0 }
  0x2c   : > { %3516 = vmatpush3.msra.mxu0 %v651_v36 }
  0x2d   : > { %3526 = vmatprep.subr.mxu0 %v3752_v0 }
  0xd7   : > { %v635_v37 = vpop.f32.mrf.mxu0 }
  0xd8   : > { %3217 = vmatmul.mubr.msk.f32.vlgmr.msra.gmra.mxu1 %vm679_vm3, %v635_v37  ;;  %3518 = vmatmul.mubr.msk.f32.vlgmr.msra.gmra.mxu0 %vm679_vm3, %v635_v37  ;;  %v1127_v37 = vld [vmem:[%s5721_s6 + $0x170] sm:$0xff] }
  0xd9   : > { %v3490_v38 = vpop.f32.mrf.mxu0  ;;  %759 = vmatprep.mubr.f32.mxu1 %v3752_v0  ;;  %3520 = vmatprep.mubr.msk.f32.mxu0 %vm3753_vm0, %v3752_v0 }
  0xdd   : > { %v640_v39 = vpop.f32.mrf.mxu0 }
  0xde   : > { %3218 = vmatmul.mubr.msk.f32.gmra.mxu1 %vm679_vm3, %v640_v39  ;;  %3521 = vmatmul.mubr.msk.f32.gmra.mxu0 %vm679_vm3, %v640_v39  ;;  %v1126_v39 = vld [vmem:[%s5721_s6 + $0x168] sm:$0xff] }
  0xdf   : > { %v3493_v40 = vpop.f32.mrf.mxu0  ;;  %765 = vmatprep.mubr.f32.mxu1 %v3752_v0  ;;  %3523 = vmatprep.mubr.msk.f32.mxu0 %vm3753_vm0, %v3752_v0 }
  0xe0   : > { %v1124_v40 = vld [vmem:[%s5721_s6 + $0x158] sm:$0xff] }
  0xe1   : > { %v645_v41 = vpop.f32.mrf.mxu0 }
  0xe2   : > { %3219 = vmatmul.mubr.msk.f32.gmra.mxu1 %vm679_vm3, %v645_v41  ;;  %3524 = vmatmul.mubr.msk.f32.gmra.mxu0 %vm679_vm3, %v645_v41  ;;  %v1123_v41 = vld [vmem:[%s5721_s6 + $0x150] sm:$0xff] }
  0xe3   : > { %v3496_v42 = vpop.f32.mrf.mxu0  ;;  %3532 = vmatprep.mubr.msk.f32.mxu0 %vm3753_vm0, %v3752_v0  ;;  %982 = vmatprep.mubr.f32.mxu1 %v3752_v0 }
  0xe4   : > { %v898_v42 = vld [vmem:[%s5720_s5 + $0x8] sm:$0xff] }
 0x198   : > { %v755_v43 = vpop.f32.mrf.mxu1  ;;  %v838_v44 = vpop.f32.mrf.mxu0 }
 0x199   : > { %v863_v49 = vmul.f32 %v854_v45, %v838_v44  ;;  %v861_v19 = vmul.f32 %v852_v4, %v755_v43  ;;  %v1121_v43 = vld [vmem:[%s5721_s6 + $0x140] sm:$0xff]  ;;  %v1120_v44 = vld [vmem:[%s5721_s6 + $0x138] sm:$0xff]  ;;  %v1118_v45 = vld [vmem:[%s5721_s6 + $0x128] sm:$0xff] }
 0x19a   : > { %v757_v46 = vpop.f32.mrf.mxu1  ;;  %v3519_v47 = vpop.f32.mrf.mxu0  ;;  %v1186_v4 = vld [vmem:[%s5721_s6 + $0x348] sm:$0xff] }
 0x19b   : > { %v881_v61 = vadd.f32 %v872_v52, %v863_v49  ;;  %v862_v15 = vmul.f32 %v853_v62, %v757_v46  ;;  %v879_v27 = vadd.f32 %v870_v22, %v861_v19  ;;  %v1117_v46 = vld [vmem:[%s5721_s6 + $0x120] sm:$0xff]  ;;  %v1199_v47 = vld [vmem:[%s5721_s6 + $0x3b0] sm:$0xff]  ;;  %v1112_v52 = vld [vmem:[%s5721_s6 + $0xf8] sm:$0xff] }
 0x19c   : > { %v1115_v49 = vld [vmem:[%s5721_s6 + $0x110] sm:$0xff]  ;;  %v1105_v62 = vld [vmem:[%s5721_s6 + $0xc0] sm:$0xff]  ;;  %v1088_v19 = vld [vmem:[%s5721_s6 + $0x38] sm:$0xff] }
 0x19d   : > { %3687 = vtanh.f32 %v881_v61  ;;  %v880_v26 = vadd.f32 %v871_v20, %v862_v15  ;;  %v1190_v61 = vld [vmem:[%s5721_s6 + $0x368] sm:$0xff]  ;;  %v1093_v15 = vld [vmem:[%s5721_s6 + $0x60] sm:$0xff]  ;;  %v1087_v20 = vld [vmem:[%s5721_s6 + $0x30] sm:$0xff] }
 0x19e   : > { %v761_v50 = vpop.f32.mrf.mxu1  ;;  %v843_v51 = vpop.f32.mrf.mxu0  ;;  %v1084_v22 = vld [vmem:[%s5721_s6 + $0x18] sm:$0xff] }
 0x19f   : > { %v866_v53 = vmul.f32 %v857_v48, %v843_v51  ;;  %v864_v10 = vmul.f32 %v855_v60, %v761_v50  ;;  %v899_v48 = vld [vmem:[%s5720_s5 + $0x10] sm:$0x3f]  ;;  %v1114_v50 = vld [vmem:[%s5721_s6 + $0x108] sm:$0xff] }
 0x1a0   : > { %v763_v55 = vpop.f32.mrf.mxu1  ;;  %v3522_v57 = vpop.f32.mrf.mxu0  ;;  %v1198_v51 = vld [vmem:[%s5721_s6 + $0x3a8] sm:$0xff] }
 0x1a1   : > { %v884_v5 = vadd.f32 %v875_v54, %v866_v53  ;;  %v865_v6 = vmul.f32 %v856_v56, %v763_v55  ;;  %v882_v25 = vadd.f32 %v873_v16, %v864_v10  ;;  %v1196_v53 = vld [vmem:[%s5721_s6 + $0x398] sm:$0xff]  ;;  %v1111_v54 = vld [vmem:[%s5721_s6 + $0xf0] sm:$0xff]  ;;  %v1109_v56 = vld [vmem:[%s5721_s6 + $0xe0] sm:$0xff] }
 0x1a2   : > { %v767_v63 = vpop.f32.mrf.mxu1  ;;  %v848_v1 = vpop.f32.mrf.mxu0  ;;  %v1195_v55 = vld [vmem:[%s5721_s6 + $0x390] sm:$0xff]  ;;  %v1193_v57 = vld [vmem:[%s5721_s6 + $0x380] sm:$0xff]  ;;  %v1106_v60 = vld [vmem:[%s5721_s6 + $0xc8] sm:$0xff] }
 0x1a3   : > { %v867_v7 = vmul.f32 %v858_v58, %v767_v63  ;;  %v869_v9 = vmul.f32 %v860_v59, %v848_v1  ;;  %3689 = vtanh.f32 %v884_v5  ;;  %v883_v23 = vadd.f32 %v874_v11, %v865_v6  ;;  %v1108_v58 = vld [vmem:[%s5721_s6 + $0xd8] sm:$0xff]  ;;  %v1189_v63 = vld [vmem:[%s5721_s6 + $0x360] sm:$0xff]  ;;  %v1103_v1 = vld [vmem:[%s5721_s6 + $0xb0] sm:$0xff] }
 0x1a4   : > { %v769_v12 = vpop.f32.mrf.mxu1  ;;  %v3525_v14 = vpop.f32.mrf.mxu0  ;;  %v1192_v59 = vld [vmem:[%s5721_s6 + $0x378] sm:$0xff]  ;;  %v1181_v10 = vld [vmem:[%s5721_s6 + $0x320] sm:$0xff] }
 0x1a5   : > { %v887_v17 = vadd.f32 %v878_v2, %v869_v9  ;;  %v868_v18 = vmul.f32 %v859_v3, %v769_v12  ;;  %v885_v21 = vadd.f32 %v876_v8, %v867_v7  ;;  %v1187_v2 = vld [vmem:[%s5721_s6 + $0x350] sm:$0xff]  ;;  %v1102_v3 = vld [vmem:[%s5721_s6 + $0xa8] sm:$0xff]  ;;  %v1100_v5 = vld [vmem:[%s5721_s6 + $0x98] sm:$0xff] }
 0x1a6   : > { %v1184_v6 = vld [vmem:[%s5721_s6 + $0x338] sm:$0xff]  ;;  %v1099_v7 = vld [vmem:[%s5721_s6 + $0x90] sm:$0xff]  ;;  %v1097_v9 = vld [vmem:[%s5721_s6 + $0x80] sm:$0xff] }
 0x1a7   : > { %v886_v24 = vadd.f32 %v877_v13, %v868_v18  ;;  %3691 = vtanh.f32 %v887_v17  ;;  %v1183_v8 = vld [vmem:[%s5721_s6 + $0x330] sm:$0xff]  ;;  %v1096_v11 = vld [vmem:[%s5721_s6 + $0x78] sm:$0xff]  ;;  %v1094_v13 = vld [vmem:[%s5721_s6 + $0x68] sm:$0xff] }
 0x1a8   : > { %v1180_v12 = vld [vmem:[%s5721_s6 + $0x318] sm:$0xff]  ;;  %v1178_v14 = vld [vmem:[%s5721_s6 + $0x308] sm:$0xff]  ;;  %v1177_v16 = vld [vmem:[%s5721_s6 + $0x300] sm:$0xff] }
 0x1a9   : > { %3693 = vtanh.f32 %v886_v24  ;;  %v1091_v17 = vld [vmem:[%s5721_s6 + $0x50] sm:$0xff]  ;;  %v1090_v18 = vld [vmem:[%s5721_s6 + $0x48] sm:$0xff]  ;;  %v1081_v24 = vld [vmem:[%s5721_s6] sm:$0xff] }
 0x1aa   : > { %3695 = vtanh.f32 %v885_v21  ;;  %v4058_v28 = vpop.eup %3687  ;;  %v1085_v21 = vld [vmem:[%s5721_s6 + $0x20] sm:$0xff] }
 0x1ab   : > { %3697 = vtanh.f32 %v883_v23  ;;  %v1082_v23 = vld [vmem:[%s5721_s6 + $0x8] sm:$0xff] }
 0x1ac   : > { %3699 = vtanh.f32 %v882_v25  ;;  %v1175_v25 = vld [vmem:[%s5721_s6 + $0x2f0] sm:$0xff] }
 0x1ad   : > { %3701 = vtanh.f32 %v880_v26  ;;  %v1174_v26 = vld [vmem:[%s5721_s6 + $0x2e8] sm:$0xff] }
 0x1ae   : > { %3703 = vtanh.f32 %v879_v27  ;;  %v1172_v27 = vld [vmem:[%s5721_s6 + $0x2d8] sm:$0xff] }
 0x1b0   : > { %v4060_v29 = vpop.eup %3689 }
 0x1b4   : > { %v4062_v30 = vpop.eup %3691 }
 0x1b5   : > { %3527 = vmatpush3.msk.msra.mxu0 %vm565_vm1, %v4062_v30 }
 0x1b6   : > { %v4064_v31 = vpop.eup %3693  ;;  %3528 = vmatprep.subr.mxu0 %v3752_v0 }
 0x1b7   : > { %v4068_v32 = vpop.eup %3695  ;;  %3223 = vmatprep.subr.msk.mxu1 %vm565_vm1, %v4064_v31  ;;  %3529 = vmatpush3.msra.mxu0 %v4060_v29 }
 0x1b8   : > { %v4073_v33 = vpop.eup %3697  ;;  %3224 = vmatpush1.msk.msra.mxu1 %vm565_vm1, %v4068_v32  ;;  %3530 = vmatprep.subr.mxu0 %v3752_v0 }
 0x1b9   : > { %v4081_v35 = vpop.eup %3699  ;;  %946 = vmatprep.subr.mxu1 %v4073_v33  ;;  %3531 = vmatpush3.msra.mxu0 %v4058_v28 }
 0x1ba   : > { %v4085_v36 = vpop.eup %3701  ;;  %947 = vmatpush1.msra.mxu1 %v4081_v35  ;;  %3533 = vmatmul.mubr.msk.f32.vlgmr.msra.gmra.mxu0 %vm555_vm2, %v897_v34 }
 0x1bb   : > { %v4092_v38 = vpop.eup %3703  ;;  %948 = vmatprep.subr.mxu1 %v4085_v36  ;;  %3535 = vmatprep.mubr.msk.f32.mxu0 %vm3753_vm0, %v3752_v0 }
 0x1bc   : > { %949 = vmatpush1.msra.mxu1 %v4092_v38  ;;  %1310 = vmatprep.subr.mxu0 %v1199_v47  ;;  %v1156_v47 = vld [vmem:[%s5721_s6 + $0x258] sm:$0xff] }
 0x1bd   : > { %3225 = vmatmul.mubr.msk.f32.vlgmr.msra.gmra.mxu1 %vm555_vm2, %v897_v34  ;;  %1211 = vmatprep.subr.mxu1 %v1127_v37  ;;  %v1171_v34 = vld [vmem:[%s5721_s6 + $0x2d0] sm:$0xff]  ;;  %v1169_v37 = vld [vmem:[%s5721_s6 + $0x2c0] sm:$0xff] }
 0x1be   : > { %988 = vmatprep.mubr.f32.mxu1 %v3752_v0  ;;  %1212 = vmatpush1.msra.mxu1 %v1126_v39  ;;  %v1168_v39 = vld [vmem:[%s5721_s6 + $0x2b8] sm:$0xff] }
 0x1bf   : > { %3536 = vmatmul.mubr.msk.f32.gmra.mxu0 %vm555_vm2, %v898_v42  ;;  %1213 = vmatprep.subr.mxu1 %v1124_v40  ;;  %v1166_v40 = vld [vmem:[%s5721_s6 + $0x2a8] sm:$0xff] }
 0x1c0   : > { %3538 = vmatprep.mubr.msk.f32.mxu0 %vm3753_vm0, %v3752_v0  ;;  %1214 = vmatpush1.msra.mxu1 %v1123_v41  ;;  %v1165_v41 = vld [vmem:[%s5721_s6 + $0x2a0] sm:$0xff] }
 0x1c1   : > { %3226 = vmatmul.mubr.msk.f32.gmra.mxu1 %vm555_vm2, %v898_v42  ;;  %1215 = vmatprep.subr.mxu1 %v1121_v43  ;;  %v1163_v42 = vld [vmem:[%s5721_s6 + $0x290] sm:$0xff]  ;;  %v1162_v43 = vld [vmem:[%s5721_s6 + $0x288] sm:$0xff] }
 0x1c2   : > { %994 = vmatprep.mubr.f32.mxu1 %v3752_v0  ;;  %1216 = vmatpush1.msra.mxu1 %v1120_v44  ;;  %v1160_v44 = vld [vmem:[%s5721_s6 + $0x278] sm:$0xff] }
 0x1c3   : > { %3539 = vmatmul.mubr.msk.f32.gmra.mxu0 %vm555_vm2, %v899_v48  ;;  %1217 = vmatprep.subr.mxu1 %v1118_v45  ;;  %v1159_v45 = vld [vmem:[%s5721_s6 + $0x270] sm:$0xff] }
 0x1c4   : > { %1218 = vmatpush1.msra.mxu1 %v1117_v46  ;;  %1311 = vmatpush1.msra.mxu0 %v1198_v51  ;;  %v1157_v46 = vld [vmem:[%s5721_s6 + $0x260] sm:$0xff]  ;;  %v1150_v51 = vld [vmem:[%s5721_s6 + $0x228] sm:$0xff] }
 0x1c5   : > { %3227 = vmatmul.mubr.msk.f32.gmra.mxu1 %vm555_vm2, %v899_v48  ;;  %1219 = vmatprep.subr.mxu1 %v1115_v49  ;;  %v1154_v48 = vld [vmem:[%s5721_s6 + $0x248] sm:$0xff]  ;;  %v1153_v49 = vld [vmem:[%s5721_s6 + $0x240] sm:$0xff] }
 0x1c6   : > { %1220 = vmatpush1.msra.mxu1 %v1114_v50  ;;  %1312 = vmatprep.subr.mxu0 %v1196_v53  ;;  %v1151_v50 = vld [vmem:[%s5721_s6 + $0x230] sm:$0xff] }
 0x1c7   : > { %1221 = vmatprep.subr.mxu1 %v1112_v52  ;;  %1313 = vmatpush1.msra.mxu0 %v1195_v55  ;;  %v1148_v52 = vld [vmem:[%s5721_s6 + $0x218] sm:$0xff]  ;;  %v1147_v53 = vld [vmem:[%s5721_s6 + $0x210] sm:$0xff] }
 0x1c8   : > { %1222 = vmatpush1.msra.mxu1 %v1111_v54  ;;  %1314 = vmatprep.subr.mxu0 %v1193_v57  ;;  %v1145_v54 = vld [vmem:[%s5721_s6 + $0x200] sm:$0xff]  ;;  %v1144_v55 = vld [vmem:[%s5721_s6 + $0x1f8] sm:$0xff] }
 0x1c9   : > { %1223 = vmatprep.subr.mxu1 %v1109_v56  ;;  %1315 = vmatpush1.msra.mxu0 %v1192_v59  ;;  %v1142_v56 = vld [vmem:[%s5721_s6 + $0x1e8] sm:$0xff]  ;;  %v1141_v57 = vld [vmem:[%s5721_s6 + $0x1e0] sm:$0xff] }
 0x1ca   : > { %1224 = vmatpush1.msra.mxu1 %v1108_v58  ;;  %1316 = vmatprep.subr.mxu0 %v1190_v61  ;;  %v1139_v58 = vld [vmem:[%s5721_s6 + $0x1d0] sm:$0xff]  ;;  %v1138_v59 = vld [vmem:[%s5721_s6 + $0x1c8] sm:$0xff]  ;;  %v1136_v61 = vld [vmem:[%s5721_s6 + $0x1b8] sm:$0xff] }
 0x1cb   : > { %1225 = vmatprep.subr.mxu1 %v1106_v60  ;;  %1317 = vmatpush1.msra.mxu0 %v1189_v63  ;;  %v1176_v60 = vld [vmem:[%s5721_s6 + $0x2f8] sm:$0xff]  ;;  %v1133_v63 = vld [vmem:[%s5721_s6 + $0x1a0] sm:$0xff] }
 0x1cc   : > { %1226 = vmatpush1.msra.mxu1 %v1105_v62  ;;  %1318 = vmatprep.subr.mxu0 %v1187_v2  ;;  %v1135_v62 = vld [vmem:[%s5721_s6 + $0x1b0] sm:$0xff]  ;;  %v1130_v2 = vld [vmem:[%s5721_s6 + $0x188] sm:$0xff] }
 0x1cd   : > { %1227 = vmatprep.subr.mxu1 %v1103_v1  ;;  %1319 = vmatpush1.msra.mxu0 %v1186_v4  ;;  %v1132_v1 = vld [vmem:[%s5721_s6 + $0x198] sm:$0xff] }
 0x1ce   : > { %1228 = vmatpush1.msra.mxu1 %v1102_v3  ;;  %1320 = vmatprep.subr.mxu0 %v1184_v6  ;;  %v1129_v3 = vld [vmem:[%s5721_s6 + $0x180] sm:$0xff]  ;;  %v1128_v4 = vld [vmem:[%s5721_s6 + $0x178] sm:$0xff] }
 0x1cf   : > { %1229 = vmatprep.subr.mxu1 %v1100_v5  ;;  %1321 = vmatpush1.msra.mxu0 %v1183_v8  ;;  %v1173_v6 = vld [vmem:[%s5721_s6 + $0x2e0] sm:$0xff] }
 0x1d0   : > { %1230 = vmatpush1.msra.mxu1 %v1099_v7  ;;  %1322 = vmatprep.subr.mxu0 %v1181_v10  ;;  %v1125_v7 = vld [vmem:[%s5721_s6 + $0x160] sm:$0xff]  ;;  %v1170_v10 = vld [vmem:[%s5721_s6 + $0x2c8] sm:$0xff] }
 0x1d1   : > { %1231 = vmatprep.subr.mxu1 %v1097_v9  ;;  %1323 = vmatpush1.msra.mxu0 %v1180_v12 }
 0x1d2   : > { %1232 = vmatpush1.msra.mxu1 %v1096_v11  ;;  %1324 = vmatprep.subr.mxu0 %v1178_v14  ;;  %v1122_v11 = vld [vmem:[%s5721_s6 + $0x148] sm:$0xff] }
 0x1d3   : > { %1233 = vmatprep.subr.mxu1 %v1094_v13  ;;  %1325 = vmatpush1.msra.mxu0 %v1177_v16  ;;  %v1167_v13 = vld [vmem:[%s5721_s6 + $0x2b0] sm:$0xff] }
 0x1d4   : > { %1234 = vmatpush1.msra.mxu1 %v1093_v15  ;;  %1358 = vmatprep.mubr.f32.mxu0 %v3752_v0  ;;  %v1119_v15 = vld [vmem:[%s5721_s6 + $0x130] sm:$0xff] }
 0x1d5   : > { %1235 = vmatprep.subr.mxu1 %v1091_v17  ;;  %3301 = vmatprep.subr.mxu0 %v1176_v60  ;;  %v1164_v17 = vld [vmem:[%s5721_s6 + $0x298] sm:$0xff] }
 0x1d6   : > { %1236 = vmatpush1.msra.mxu1 %v1090_v18  ;;  %v1188_v60 = vld [vmem:[%s5721_s6 + $0x358] sm:$0xff] }
 0x1d7   : > { %1237 = vmatprep.subr.mxu1 %v1088_v19  ;;  %v1116_v19 = vld [vmem:[%s5721_s6 + $0x118] sm:$0xff] }
 0x1d8   : > { %1238 = vmatpush1.msra.mxu1 %v1087_v20 }
 0x1d9   : > { %1239 = vmatprep.subr.mxu1 %v1085_v21  ;;  %v1161_v21 = vld [vmem:[%s5721_s6 + $0x280] sm:$0xff] }
 0x1da   : > { %1240 = vmatpush1.msra.mxu1 %v1084_v22 }
 0x1db   : > { %1241 = vmatprep.subr.mxu1 %v1082_v23  ;;  %v1113_v23 = vld [vmem:[%s5721_s6 + $0x100] sm:$0xff] }
 0x1dc   : > { %1242 = vmatpush1.msra.mxu1 %v1081_v24 }
 0x1dd   : > { %1243 = vmatprep.subr.mxu1 %v1175_v25  ;;  %v1158_v25 = vld [vmem:[%s5721_s6 + $0x268] sm:$0xff] }
 0x1de   : > { %1244 = vmatpush2.msra.mxu1 %v1174_v26 }
 0x1df   : > { %1245 = vmatprep.subr.mxu1 %v1172_v27  ;;  %v1110_v27 = vld [vmem:[%s5721_s6 + $0xe8] sm:$0xff] }
 0x1e0   : > { %1246 = vmatpush2.msra.mxu1 %v1171_v34 }
 0x1e1   : > { %1247 = vmatprep.subr.mxu1 %v1169_v37  ;;  %v1155_v37 = vld [vmem:[%s5721_s6 + $0x250] sm:$0xff] }
 0x1e2   : > { %1248 = vmatpush2.msra.mxu1 %v1168_v39  ;;  %v1107_v39 = vld [vmem:[%s5721_s6 + $0xd0] sm:$0xff] }
 0x1e3   : > { %1249 = vmatprep.subr.mxu1 %v1166_v40  ;;  %v1152_v40 = vld [vmem:[%s5721_s6 + $0x238] sm:$0xff] }
 0x1e4   : > { %1250 = vmatpush2.msra.mxu1 %v1165_v41  ;;  %v1104_v41 = vld [vmem:[%s5721_s6 + $0xb8] sm:$0xff] }
 0x1e5   : > { %1251 = vmatprep.subr.mxu1 %v1163_v42  ;;  %v1149_v42 = vld [vmem:[%s5721_s6 + $0x220] sm:$0xff] }
 0x1e6   : > { %1252 = vmatpush2.msra.mxu1 %v1162_v43  ;;  %v1101_v43 = vld [vmem:[%s5721_s6 + $0xa0] sm:$0xff] }
 0x1e7   : > { %1253 = vmatprep.subr.mxu1 %v1160_v44  ;;  %v1146_v44 = vld [vmem:[%s5721_s6 + $0x208] sm:$0xff] }
 0x1e8   : > { %1254 = vmatpush2.msra.mxu1 %v1159_v45  ;;  %v1098_v45 = vld [vmem:[%s5721_s6 + $0x88] sm:$0xff] }
 0x1e9   : > { %1255 = vmatprep.subr.mxu1 %v1157_v46  ;;  %v1143_v46 = vld [vmem:[%s5721_s6 + $0x1f0] sm:$0xff] }
 0x1ea   : > { %1256 = vmatpush2.msra.mxu1 %v1156_v47  ;;  %v1095_v47 = vld [vmem:[%s5721_s6 + $0x70] sm:$0xff] }
 0x1eb   : > { %1257 = vmatprep.subr.mxu1 %v1154_v48  ;;  %v1140_v48 = vld [vmem:[%s5721_s6 + $0x1d8] sm:$0xff] }
 0x1ec   : > { %1258 = vmatpush2.msra.mxu1 %v1153_v49  ;;  %v1092_v49 = vld [vmem:[%s5721_s6 + $0x58] sm:$0xff] }
 0x1ed   : > { %1259 = vmatprep.subr.mxu1 %v1151_v50  ;;  %v1137_v50 = vld [vmem:[%s5721_s6 + $0x1c0] sm:$0xff] }
 0x1ee   : > { %1260 = vmatpush2.msra.mxu1 %v1150_v51  ;;  %v1089_v51 = vld [vmem:[%s5721_s6 + $0x40] sm:$0xff] }
 0x1ef   : > { %1261 = vmatprep.subr.mxu1 %v1148_v52  ;;  %v1134_v52 = vld [vmem:[%s5721_s6 + $0x1a8] sm:$0xff] }
 0x1f0   : > { %1262 = vmatpush2.msra.mxu1 %v1147_v53  ;;  %v1086_v53 = vld [vmem:[%s5721_s6 + $0x28] sm:$0xff] }
 0x1f1   : > { %1263 = vmatprep.subr.mxu1 %v1145_v54  ;;  %v1131_v54 = vld [vmem:[%s5721_s6 + $0x190] sm:$0xff] }
 0x1f2   : > { %1264 = vmatpush2.msra.mxu1 %v1144_v55  ;;  %v1083_v55 = vld [vmem:[%s5721_s6 + $0x10] sm:$0xff] }
 0x1f3   : > { %1265 = vmatprep.subr.mxu1 %v1142_v56  ;;  %v1200_v56 = vld [vmem:[%s5721_s6 + $0x3b8] sm:$0xff] }
 0x1f4   : > { %1266 = vmatpush2.msra.mxu1 %v1141_v57  ;;  %v1197_v57 = vld [vmem:[%s5721_s6 + $0x3a0] sm:$0xff] }
 0x1f5   : > { %1267 = vmatprep.subr.mxu1 %v1139_v58  ;;  %v1194_v58 = vld [vmem:[%s5721_s6 + $0x388] sm:$0xff] }
 0x1f6   : > { %1268 = vmatpush2.msra.mxu1 %v1138_v59  ;;  %v1191_v59 = vld [vmem:[%s5721_s6 + $0x370] sm:$0xff] }
 0x1f7   : > { %1269 = vmatprep.subr.mxu1 %v1136_v61  ;;  %v1185_v61 = vld [vmem:[%s5721_s6 + $0x340] sm:$0xff] }
 0x1f8   : > { %1270 = vmatpush2.msra.mxu1 %v1135_v62  ;;  %v1182_v62 = vld [vmem:[%s5721_s6 + $0x328] sm:$0xff] }
 0x1f9   : > { %1271 = vmatprep.subr.mxu1 %v1133_v63  ;;  %v1179_v63 = vld [vmem:[%s5721_s6 + $0x310] sm:$0xff] }
 0x1fa   : > { %1272 = vmatpush2.msra.mxu1 %v1132_v1 }
 0x1fb   : > { %1273 = vmatprep.subr.mxu1 %v1130_v2 }
 0x1fc   : > { %1274 = vmatpush2.msra.mxu1 %v1129_v3 }
 0x27a   : > { %v4358_v5 = vpop.f32.mrf.mxu0 }
 0x27b   : > { %3232 = vmatmul.mubr.msk.f32.vlgmr.msra.gmra.mxu0 %vm1201_vm4, %v4358_v5 }
 0x27c   : > { %3302 = vmatpush3.msra.mxu0 %v1128_v4  ;;  %v3534_v8 = vpop.f32.mrf.mxu0  ;;  %1364 = vmatprep.mubr.f32.mxu0 %v3752_v0 }
 0x27d   : > { %v4368_v9 = vpop.f32.mrf.mxu1  ;;  %3303 = vmatprep.subr.mxu0 %v1173_v6 }
 0x27e   : > { %3304 = vmatpush3.msra.mxu0 %v1125_v7 }
 0x27f   : > { %v986_v12 = vpop.f32.mrf.mxu1  ;;  %v4380_v14 = vpop.f32.mrf.mxu0  ;;  %3305 = vmatprep.subr.mxu0 %v1170_v10 }
 0x280   : > { %1275 = vmatprep.mubr.f32.mxu1 %v986_v12  ;;  %3306 = vmatpush3.msra.mxu0 %v1122_v11  ;;  %v1541_v11 = vld [vmem:[%s5722_s7 + $0x20] sm:$0xff] }
 0x281   : > { %v4385_v16 = vpop.f32.mrf.mxu1  ;;  %1276 = vmatmul.mubr.f32.vlgmr.msra.gmra.mxu1 %v4368_v9  ;;  %v3537_v18 = vpop.f32.mrf.mxu0  ;;  %3307 = vmatprep.subr.mxu0 %v1167_v13 }
 0x282   : > { %3233 = vmatmul.mubr.msk.f32.gmra.mxu0 %vm1201_vm4, %v4380_v14 }
 0x283   : > { %3308 = vmatpush3.msra.mxu0 %v1119_v15  ;;  %v4396_v20 = vpop.f32.mrf.mxu1  ;;  %v4401_v22 = vpop.f32.mrf.mxu0  ;;  %1370 = vmatprep.mubr.f32.mxu0 %v3752_v0 }
 0x284   : > { %3309 = vmatprep.subr.mxu0 %v1164_v17  ;;  %1281 = vmatprep.mubr.f32.mxu1 %v4396_v20 }
 0x285   : > { %3310 = vmatpush3.msra.mxu0 %v1116_v19  ;;  %v4408_v24 = vpop.f32.mrf.mxu1  ;;  %1282 = vmatmul.mubr.f32.gmra.mxu1 %v4385_v16  ;;  %v3540_v26 = vpop.f32.mrf.mxu0 }
 0x286   : > { %3311 = vmatprep.subr.mxu0 %v1161_v21  ;;  %3234 = vmatmul.mubr.msk.f32.gmra.mxu0 %vm1201_vm4, %v4401_v22  ;;  %v1544_v26 = vld [vmem:[%s5722_s7 + $0x38] sm:$0x3f] }
 0x287   : > { %3312 = vmatpush3.msra.mxu0 %v1113_v23  ;;  %v998_v34 = vpop.f32.mrf.mxu1  ;;  %1441 = vmatprep.mubr.f32.mxu0 %v986_v12  ;;  %v1540_v12 = vld [vmem:[%s5722_s7 + $0x18] sm:$0xff] }
 0x288   : > { %3313 = vmatprep.subr.mxu0 %v1158_v25  ;;  %1287 = vmatprep.mubr.f32.mxu1 %v998_v34 }
 0x289   : > { %3314 = vmatpush3.msra.mxu0 %v1110_v27  ;;  %1288 = vmatmul.mubr.f32.gmra.mxu1 %v4408_v24  ;;  %v1537_v27 = vld [vmem:[%s5722_s7] sm:$0xff] }
 0x28a   : > { %3315 = vmatprep.subr.mxu0 %v1155_v37  ;;  %1667 = vmatprep.mubr.f32.mxu1 %v3752_v0 }
 0x28b   : > { %3316 = vmatpush3.msra.mxu0 %v1107_v39 }
 0x28c   : > { %3317 = vmatprep.subr.mxu0 %v1152_v40 }
 0x28d   : > { %3318 = vmatpush3.msra.mxu0 %v1104_v41  ;;  %v1562_v41 = vld [vmem:[%s5723_s8 + $0x38] sm:$0x3f] }
 0x28e   : > { %3319 = vmatprep.subr.mxu0 %v1149_v42 }
 0x28f   : > { %3320 = vmatpush3.msra.mxu0 %v1101_v43 }
 0x290   : > { %3321 = vmatprep.subr.mxu0 %v1146_v44 }
 0x291   : > { %3322 = vmatpush3.msra.mxu0 %v1098_v45 }
 0x292   : > { %3323 = vmatprep.subr.mxu0 %v1143_v46  ;;  %v1556_v46 = vld [vmem:[%s5723_s8 + $0x8] sm:$0xff] }
 0x293   : > { %3324 = vmatpush3.msra.mxu0 %v1095_v47 }
 0x294   : > { %3325 = vmatprep.subr.mxu0 %v1140_v48  ;;  %v1555_v48 = vld [vmem:[%s5723_s8] sm:$0xff] }
 0x295   : > { %3326 = vmatpush3.msra.mxu0 %v1092_v49 }
 0x296   : > { %3327 = vmatprep.subr.mxu0 %v1137_v50 }
 0x297   : > { %3328 = vmatpush3.msra.mxu0 %v1089_v51 }
 0x298   : > { %3329 = vmatprep.subr.mxu0 %v1134_v52 }
 0x299   : > { %3330 = vmatpush3.msra.mxu0 %v1086_v53 }
 0x29a   : > { %3331 = vmatprep.subr.mxu0 %v1131_v54 }
 0x29b   : > { %3332 = vmatpush3.msra.mxu0 %v1083_v55 }
 0x29c   : > { %1442 = vmatmul.mubr.f32.vlgmr.msra.gmra.mxu0 %v4368_v9  ;;  %3541 = vmatprep.subr.mxu0 %v3752_v0 }
 0x29d   : > { %3542 = vmatpush3.msra.mxu0 %v1200_v56  ;;  %1446 = vmatprep.mubr.f32.mxu0 %v4396_v20 }
 0x29e   : > { %3543 = vmatprep.subr.mxu0 %v3752_v0 }
 0x29f   : > { %3544 = vmatpush3.msra.mxu0 %v1197_v57 }
 0x2a0   : > { %1447 = vmatmul.mubr.f32.gmra.mxu0 %v4385_v16  ;;  %3545 = vmatprep.subr.mxu0 %v3752_v0  ;;  %v1543_v16 = vld [vmem:[%s5722_s7 + $0x30] sm:$0x3f] }
 0x2a1   : > { %3546 = vmatpush3.msra.mxu0 %v1194_v58  ;;  %1451 = vmatprep.mubr.f32.mxu0 %v998_v34  ;;  %v1558_v34 = vld [vmem:[%s5723_s8 + $0x18] sm:$0xff] }
 0x2a2   : > { %3547 = vmatprep.subr.mxu0 %v3752_v0 }
 0x2a3   : > { %3548 = vmatpush3.msra.mxu0 %v1191_v59 }
 0x2a4   : > { %1452 = vmatmul.mubr.f32.gmra.mxu0 %v4408_v24  ;;  %3549 = vmatprep.subr.mxu0 %v3752_v0  ;;  %v1561_v24 = vld [vmem:[%s5723_s8 + $0x30] sm:$0x3f] }
 0x2a5   : > { %3550 = vmatpush3.msra.mxu0 %v1188_v60  ;;  %3557 = vmatprep.mubr.msk.f32.mxu0 %vm3753_vm0, %v3752_v0 }
 0x2a6   : > { %3551 = vmatprep.subr.mxu0 %v3752_v0 }
 0x2a7   : > { %3552 = vmatpush3.msra.mxu0 %v1185_v61  ;;  %v4567_v61 = vld [vmem:[%s5724_s9] sm:$0xff] }
 0x2a8   : > { %3553 = vmatprep.subr.mxu0 %v3752_v0 }
 0x2a9   : > { %3554 = vmatpush3.msra.mxu0 %v1182_v62  ;;  %v1812_v62 = vld [vmem:[%s5725_s10 + $0x170] sm:$0xff] }
 0x2aa   : > { %3555 = vmatprep.subr.mxu0 %v3752_v0 }
 0x2ab   : > { %3556 = vmatpush3.msra.mxu0 %v1179_v63 }
 0x2ac   : > { %3558 = vmatmul.mubr.msk.f32.vlgmr.msra.gmra.mxu0 %vm1201_vm4, %v4358_v5  ;;  %3566 = vmatprep.subr.mxu0 %v3752_v0 }
 0x2ad   : > { %3560 = vmatprep.mubr.msk.f32.mxu0 %vm3753_vm0, %v3752_v0 }
 0x2b0   : > { %3561 = vmatmul.mubr.msk.f32.gmra.mxu0 %vm1201_vm4, %v4380_v14  ;;  %v1559_v14 = vld [vmem:[%s5723_s8 + $0x20] sm:$0xff] }
 0x2b1   : > { %3563 = vmatprep.mubr.msk.f32.mxu0 %vm3753_vm0, %v3752_v0 }
 0x2b4   : > { %3564 = vmatmul.mubr.msk.f32.gmra.mxu0 %vm1201_vm4, %v4401_v22  ;;  %v1538_v22 = vld [vmem:[%s5722_s7 + $0x8] sm:$0xff] }
 0x2b5   : > { %3572 = vmatprep.mubr.msk.f32.mxu0 %vm3753_vm0, %v3752_v0 }
 0x33b   : > { %v1360_v1 = vpop.f32.mrf.mxu0 }
 0x33d   : > { %v1362_v2 = vpop.f32.mrf.mxu0 }
 0x341   : > { %v1277_v3 = vpop.f32.mrf.mxu1 }
 0x342   : > { %v1366_v4 = vpop.f32.mrf.mxu0  ;;  %v1361_v21 = vadd.f32 %v1360_v1, %v1277_v3  ;;  %v1811_v1 = vld [vmem:[%s5725_s10 + $0x168] sm:$0xff] }
 0x343   : > { %v1279_v5 = vpop.f32.mrf.mxu1 }
 0x344   : > { %v1368_v6 = vpop.f32.mrf.mxu0  ;;  %v1363_v18 = vadd.f32 %v1362_v2, %v1279_v5  ;;  %v1546_v45 = vmul.f32 %v1537_v27, %v1361_v21  ;;  %v1809_v2 = vld [vmem:[%s5725_s10 + $0x158] sm:$0xff]  ;;  %v4587_v5 = vld [vmem:[%s5724_s9 + $0x8] sm:$0xff]  ;;  %v1790_v27 = vld [vmem:[%s5725_s10 + $0xc0] sm:$0xff] }
 0x345   : > { %v1283_v7 = vpop.f32.mrf.mxu1  ;;  %v1793_v21 = vld [vmem:[%s5725_s10 + $0xd8] sm:$0xff] }
 0x346   : > { %v1372_v8 = vpop.f32.mrf.mxu0  ;;  %v1367_v9 = vadd.f32 %v1366_v4, %v1283_v7  ;;  %v1547_v42 = vmul.f32 %v1538_v22, %v1363_v18  ;;  %v1564_v51 = vadd.f32 %v1555_v48, %v1546_v45  ;;  %v1808_v4 = vld [vmem:[%s5725_s10 + $0x150] sm:$0xff]  ;;  %v1805_v7 = vld [vmem:[%s5725_s10 + $0x138] sm:$0xff]  ;;  %v1563_v48 = vld [vmem:[%s5723_s8 + $0x40] sm:$0x3f] }
 0x347   : > { %v1285_v10 = vpop.f32.mrf.mxu1 }
 0x348   : > { %v1369_v13 = vadd.f32 %v1368_v6, %v1285_v10  ;;  %v1374_v17 = vpop.f32.mrf.mxu0  ;;  %v1549_v23 = vmul.f32 %v1540_v12, %v1367_v9  ;;  %v1565_v50 = vadd.f32 %v1556_v46, %v1547_v42  ;;  %v1806_v6 = vld [vmem:[%s5725_s10 + $0x140] sm:$0xff]  ;;  %v1800_v12 = vld [vmem:[%s5725_s10 + $0x110] sm:$0xff]  ;;  %v1785_v46 = vld [vmem:[%s5725_s10 + $0x98] sm:$0xff] }
 0x349   : > { %v1289_v15 = vpop.f32.mrf.mxu1  ;;  %v1802_v10 = vld [vmem:[%s5725_s10 + $0x120] sm:$0xff] }
 0x34a   : > { %v1550_v19 = vmul.f32 %v1541_v11, %v1369_v13  ;;  %v1373_v20 = vadd.f32 %v1372_v8, %v1289_v15  ;;  %v1567_v47 = vadd.f32 %v1558_v34, %v1549_v23  ;;  %v1803_v8 = vld [vmem:[%s5725_s10 + $0x128] sm:$0xff]  ;;  %v4607_v11 = vld [vmem:[%s5724_s9 + $0x10] sm:$0x3f]  ;;  %v1797_v15 = vld [vmem:[%s5725_s10 + $0xf8] sm:$0xff] }
 0x34b   : > { %v1291_v25 = vpop.f32.mrf.mxu1  ;;  %v1545_v42 = vld [vmem:[%s5722_s7 + $0x40] sm:$0x3f] }
 0x34c   : > { %v1568_v37 = vadd.f32 %v1559_v14, %v1550_v19  ;;  %v1552_v39 = vmul.f32 %v1543_v16, %v1373_v20  ;;  %v1375_v40 = vadd.f32 %v1374_v17, %v1291_v25  ;;  %v1799_v14 = vld [vmem:[%s5725_s10 + $0x108] sm:$0xff]  ;;  %v1796_v17 = vld [vmem:[%s5725_s10 + $0xf0] sm:$0xff]  ;;  %v1794_v19 = vld [vmem:[%s5725_s10 + $0xe0] sm:$0xff] }
 0x34d   : > { %v1542_v25 = vld [vmem:[%s5722_s7 + $0x28] sm:$0xff] }
 0x34e   : > { %v1570_v43 = vadd.f32 %v1561_v24, %v1552_v39  ;;  %v1553_v44 = vmul.f32 %v1544_v26, %v1375_v40  ;;  %3705 = vtanh.f32 %v1568_v37  ;;  %v1791_v24 = vld [vmem:[%s5725_s10 + $0xc8] sm:$0xff]  ;;  %v1788_v39 = vld [vmem:[%s5725_s10 + $0xb0] sm:$0xff] }
 0x34f   : > { %v1539_v40 = vld [vmem:[%s5722_s7 + $0x10] sm:$0xff] }
 0x350   : > { %v1571_v49 = vadd.f32 %v1562_v41, %v1553_v44  ;;  %3707 = vtanh.f32 %v1570_v43  ;;  %v1787_v43 = vld [vmem:[%s5725_s10 + $0xa8] sm:$0xff] }
 0x352   : > { %3709 = vtanh.f32 %v1571_v49 }
 0x353   : > { %3711 = vtanh.f32 %v1567_v47  ;;  %v1560_v47 = vld [vmem:[%s5723_s8 + $0x28] sm:$0xff] }
 0x354   : > { %3713 = vtanh.f32 %v1565_v50  ;;  %v1784_v50 = vld [vmem:[%s5725_s10 + $0x90] sm:$0xff] }
 0x355   : > { %3715 = vtanh.f32 %v1564_v51 }
 0x35b   : > { %v3706_v53 = vpop.eup %3705 }
 0x35c   : > { %v3333_v52 = vpop.f32.mrf.mxu0 }
 0x35d   : > { %v3708_v54 = vpop.eup %3707 }
 0x35e   : > { %v3334_v55 = vpop.f32.mrf.mxu0 }
 0x35f   : > { %v3710_v56 = vpop.eup %3709  ;;  %v3335_v22 = vadd.f32 %v3334_v55, %v3333_v52  ;;  %v1781_v55 = vld [vmem:[%s5725_s10 + $0x78] sm:$0xff] }
 0x360   : > { %v3712_v57 = vpop.eup %3711  ;;  %v3336_v58 = vpop.f32.mrf.mxu0  ;;  %3238 = vmatprep.subr.msk.mxu1 %vm565_vm1, %v3710_v56 }
 0x361   : > { %3239 = vmatpush1.msk.msra.mxu1 %vm565_vm1, %v3708_v54  ;;  %v3714_v60 = vpop.eup %3713  ;;  %v1557_v54 = vld [vmem:[%s5723_s8 + $0x10] sm:$0xff] }
 0x362   : > { %v3337_v59 = vpop.f32.mrf.mxu0  ;;  %1631 = vmatprep.subr.mxu1 %v3706_v53  ;;  %v3716_v63 = vpop.eup %3715  ;;  %v1782_v53 = vld [vmem:[%s5725_s10 + $0x80] sm:$0xff] }
 0x363   : > { %1632 = vmatpush1.msra.mxu1 %v3712_v57  ;;  %v3338_v18 = vadd.f32 %v3337_v59, %v3336_v58  ;;  %v1779_v58 = vld [vmem:[%s5725_s10 + $0x68] sm:$0xff]  ;;  %v1778_v59 = vld [vmem:[%s5725_s10 + $0x60] sm:$0xff] }
 0x364   : > { %1633 = vmatprep.subr.mxu1 %v3714_v60  ;;  %v3339_v3 = vpop.f32.mrf.mxu0 }
 0x365   : > { %1634 = vmatpush1.msra.mxu1 %v3716_v63  ;;  %v1775_v63 = vld [vmem:[%s5725_s10 + $0x48] sm:$0xff] }
 0x366   : > { %3240 = vmatmul.mubr.msk.f32.vlgmr.msra.gmra.mxu1 %vm555_vm2, %v4567_v61  ;;  %1895 = vmatprep.subr.mxu1 %v1812_v62  ;;  %v3340_v9 = vpop.f32.mrf.mxu0  ;;  %v1776_v62 = vld [vmem:[%s5725_s10 + $0x50] sm:$0xff] }
 0x367   : > { %1673 = vmatprep.mubr.f32.mxu1 %v3752_v0  ;;  %1896 = vmatpush1.msra.mxu1 %v1811_v1  ;;  %v3341_v34 = vadd.f32 %v3340_v9, %v3339_v3  ;;  %v1773_v1 = vld [vmem:[%s5725_s10 + $0x38] sm:$0xff]  ;;  %v1770_v3 = vld [vmem:[%s5725_s10 + $0x20] sm:$0xff]  ;;  %v1859_v9 = vld [vmem:[%s5725_s10 + $0x2e8] sm:$0xff] }
 0x368   : > { %1897 = vmatprep.subr.mxu1 %v1809_v2  ;;  %v1772_v2 = vld [vmem:[%s5725_s10 + $0x30] sm:$0xff] }
 0x369   : > { %1898 = vmatpush1.msra.mxu1 %v1808_v4  ;;  %v1769_v4 = vld [vmem:[%s5725_s10 + $0x18] sm:$0xff] }
 0x36a   : > { %3241 = vmatmul.mubr.msk.f32.gmra.mxu1 %vm555_vm2, %v4587_v5  ;;  %1899 = vmatprep.subr.mxu1 %v1806_v6  ;;  %v1767_v6 = vld [vmem:[%s5725_s10 + $0x8] sm:$0xff] }
 0x36b   : > { %1679 = vmatprep.mubr.f32.mxu1 %v3752_v0  ;;  %1900 = vmatpush1.msra.mxu1 %v1805_v7  ;;  %v1766_v7 = vld [vmem:[%s5725_s10] sm:$0xff] }
 0x36c   : > { %v1523_v13 = vpop.f32.mrf.mxu0  ;;  %1901 = vmatprep.subr.mxu1 %v1803_v8  ;;  %v1860_v8 = vld [vmem:[%s5725_s10 + $0x2f0] sm:$0xff] }
 0x36d   : > { %1902 = vmatpush1.msra.mxu1 %v1802_v10  ;;  %v1524_v37 = vadd.f32 %v3335_v22, %v1523_v13  ;;  %v1857_v10 = vld [vmem:[%s5725_s10 + $0x2d8] sm:$0xff]  ;;  %v1854_v13 = vld [vmem:[%s5725_s10 + $0x2c0] sm:$0xff] }
 0x36e   : > { %v3559_v16 = vpop.f32.mrf.mxu0  ;;  %3242 = vmatmul.mubr.msk.f32.gmra.mxu1 %vm555_vm2, %v4607_v11  ;;  %1903 = vmatprep.subr.mxu1 %v1800_v12  ;;  %v1856_v12 = vld [vmem:[%s5725_s10 + $0x2d0] sm:$0xff]  ;;  %v1845_v22 = vld [vmem:[%s5725_s10 + $0x278] sm:$0xff] }
 0x36f   : > { %1904 = vmatpush1.msra.mxu1 %v1799_v14  ;;  %v1548_v51 = vmul.f32 %v1539_v40, %v1524_v37  ;;  %v1851_v16 = vld [vmem:[%s5725_s10 + $0x2a8] sm:$0xff]  ;;  %v1838_v37 = vld [vmem:[%s5725_s10 + $0x240] sm:$0xff]  ;;  %v1836_v40 = vld [vmem:[%s5725_s10 + $0x230] sm:$0xff] }
 0x370   : > { %v1528_v20 = vpop.f32.mrf.mxu0  ;;  %1905 = vmatprep.subr.mxu1 %v1797_v15  ;;  %v1853_v15 = vld [vmem:[%s5725_s10 + $0x2b8] sm:$0xff] }
 0x371   : > { %v1529_v23 = vadd.f32 %v3338_v18, %v1528_v20  ;;  %1906 = vmatpush1.msra.mxu1 %v1796_v17  ;;  %v1566_v60 = vadd.f32 %v1557_v54, %v1548_v51  ;;  %v1850_v18 = vld [vmem:[%s5725_s10 + $0x2a0] sm:$0xff]  ;;  %v1868_v54 = vld [vmem:[%s5725_s10 + $0x330] sm:$0xff] }
 0x372   : > { %v3562_v26 = vpop.f32.mrf.mxu0  ;;  %1907 = vmatprep.subr.mxu1 %v1794_v19  ;;  %v1848_v19 = vld [vmem:[%s5725_s10 + $0x290] sm:$0xff]  ;;  %v1826_v51 = vld [vmem:[%s5725_s10 + $0x1e0] sm:$0xff] }
 0x373   : > { %1908 = vmatpush1.msra.mxu1 %v1793_v21  ;;  %v1551_v44 = vmul.f32 %v1542_v25, %v1529_v23  ;;  %v1847_v21 = vld [vmem:[%s5725_s10 + $0x288] sm:$0xff]  ;;  %v1884_v23 = vld [vmem:[%s5725_s10 + $0x3b0] sm:$0xff]  ;;  %v1842_v26 = vld [vmem:[%s5725_s10 + $0x260] sm:$0xff] }
 0x374   : > { %v1533_v41 = vpop.f32.mrf.mxu0  ;;  %1909 = vmatprep.subr.mxu1 %v1791_v24  ;;  %v1844_v24 = vld [vmem:[%s5725_s10 + $0x270] sm:$0xff]  ;;  %v1883_v25 = vld [vmem:[%s5725_s10 + $0x3a8] sm:$0xff] }
 0x375   : > { %v1534_v45 = vadd.f32 %v3341_v34, %v1533_v41  ;;  %1910 = vmatpush1.msra.mxu1 %v1790_v27  ;;  %v1569_v56 = vadd.f32 %v1560_v47, %v1551_v44  ;;  %v1839_v27 = vld [vmem:[%s5725_s10 + $0x248] sm:$0xff]  ;;  %v1881_v34 = vld [vmem:[%s5725_s10 + $0x398] sm:$0xff]  ;;  %v1878_v41 = vld [vmem:[%s5725_s10 + $0x380] sm:$0xff] }
 0x376   : > { %v3565_v49 = vpop.f32.mrf.mxu0  ;;  %1911 = vmatprep.subr.mxu1 %v1788_v39  ;;  %v1880_v39 = vld [vmem:[%s5725_s10 + $0x390] sm:$0xff]  ;;  %v1874_v47 = vld [vmem:[%s5725_s10 + $0x360] sm:$0xff] }
 0x377   : > { %v1554_v52 = vmul.f32 %v1545_v42, %v1534_v45  ;;  %1912 = vmatpush1.msra.mxu1 %v1787_v43  ;;  %v1833_v42 = vld [vmem:[%s5725_s10 + $0x218] sm:$0xff]  ;;  %v1832_v44 = vld [vmem:[%s5725_s10 + $0x210] sm:$0xff]  ;;  %v1875_v45 = vld [vmem:[%s5725_s10 + $0x368] sm:$0xff] }
 0x378   : > { %1913 = vmatprep.subr.mxu1 %v1785_v46  ;;  %v1877_v43 = vld [vmem:[%s5725_s10 + $0x378] sm:$0xff]  ;;  %v1830_v46 = vld [vmem:[%s5725_s10 + $0x200] sm:$0xff]  ;;  %v1827_v49 = vld [vmem:[%s5725_s10 + $0x1e8] sm:$0xff] }
 0x379   : > { %v1572_v57 = vadd.f32 %v1563_v48, %v1554_v52  ;;  %1914 = vmatpush1.msra.mxu1 %v1784_v50  ;;  %v1872_v48 = vld [vmem:[%s5725_s10 + $0x350] sm:$0xff]  ;;  %v1871_v50 = vld [vmem:[%s5725_s10 + $0x348] sm:$0xff]  ;;  %v1869_v52 = vld [vmem:[%s5725_s10 + $0x338] sm:$0xff] }
 0x37a   : > { %1915 = vmatprep.subr.mxu1 %v1782_v53  ;;  %v1824_v53 = vld [vmem:[%s5725_s10 + $0x1d0] sm:$0xff] }
 0x37b   : > { %3717 = vtanh.f32 %v1572_v57  ;;  %1916 = vmatpush1.msra.mxu1 %v1781_v55  ;;  %v1823_v55 = vld [vmem:[%s5725_s10 + $0x1c8] sm:$0xff]  ;;  %v1821_v57 = vld [vmem:[%s5725_s10 + $0x1b8] sm:$0xff] }
 0x37c   : > { %1917 = vmatprep.subr.mxu1 %v1779_v58  ;;  %3719 = vtanh.f32 %v1569_v56  ;;  %v1866_v56 = vld [vmem:[%s5725_s10 + $0x320] sm:$0xff]  ;;  %v1820_v58 = vld [vmem:[%s5725_s10 + $0x1b0] sm:$0xff] }
 0x37d   : > { %1918 = vmatpush1.msra.mxu1 %v1778_v59  ;;  %3721 = vtanh.f32 %v1566_v60  ;;  %v1818_v59 = vld [vmem:[%s5725_s10 + $0x1a0] sm:$0xff]  ;;  %v1865_v60 = vld [vmem:[%s5725_s10 + $0x318] sm:$0xff] }
 0x37e   : > { %1919 = vmatprep.subr.mxu1 %v1776_v62  ;;  %v1817_v62 = vld [vmem:[%s5725_s10 + $0x198] sm:$0xff] }
 0x37f   : > { %1920 = vmatpush1.msra.mxu1 %v1775_v63  ;;  %v1863_v63 = vld [vmem:[%s5725_s10 + $0x308] sm:$0xff] }
 0x380   : > { %1921 = vmatprep.subr.mxu1 %v1773_v1  ;;  %v1815_v1 = vld [vmem:[%s5725_s10 + $0x188] sm:$0xff] }
 0x381   : > { %1922 = vmatpush1.msra.mxu1 %v1772_v2  ;;  %v1862_v2 = vld [vmem:[%s5725_s10 + $0x300] sm:$0xff] }
 0x382   : > { %1923 = vmatprep.subr.mxu1 %v1770_v3  ;;  %v1814_v3 = vld [vmem:[%s5725_s10 + $0x180] sm:$0xff] }
 0x383   : > { %1924 = vmatpush1.msra.mxu1 %v1769_v4  ;;  %v1861_v4 = vld [vmem:[%s5725_s10 + $0x2f8] sm:$0xff] }
 0x384   : > { %1925 = vmatprep.subr.mxu1 %v1767_v6 }
 0x385   : > { %1926 = vmatpush1.msra.mxu1 %v1766_v7 }
 0x386   : > { %1927 = vmatprep.subr.mxu1 %v1860_v8 }
 0x387   : > { %1928 = vmatpush2.msra.mxu1 %v1859_v9 }
 0x388   : > { %v3718_v14 = vpop.eup %3717  ;;  %1929 = vmatprep.subr.mxu1 %v1857_v10 }
 0x389   : > { %3567 = vmatpush3.msk.msra.mxu0 %vm565_vm1, %v3718_v14  ;;  %1930 = vmatpush2.msra.mxu1 %v1856_v12  ;;  %v3720_v17 = vpop.eup %3719 }
 0x38a   : > { %3568 = vmatprep.subr.mxu0 %v3752_v0  ;;  %1931 = vmatprep.subr.mxu1 %v1854_v13  ;;  %v3722_v20 = vpop.eup %3721  ;;  %v1813_v13 = vld [vmem:[%s5725_s10 + $0x178] sm:$0xff] }
 0x38b   : > { %3569 = vmatpush3.msra.mxu0 %v3720_v17  ;;  %1932 = vmatpush2.msra.mxu1 %v1853_v15  ;;  %v1858_v15 = vld [vmem:[%s5725_s10 + $0x2e0] sm:$0xff] }
 0x38c   : > { %3570 = vmatprep.subr.mxu0 %v3752_v0  ;;  %1933 = vmatprep.subr.mxu1 %v1851_v16  ;;  %v1810_v16 = vld [vmem:[%s5725_s10 + $0x160] sm:$0xff] }
 0x38d   : > { %3571 = vmatpush3.msra.mxu0 %v3722_v20  ;;  %1934 = vmatpush2.msra.mxu1 %v1850_v18  ;;  %v1855_v18 = vld [vmem:[%s5725_s10 + $0x2c8] sm:$0xff] }
 0x38e   : > { %3573 = vmatmul.mubr.msk.f32.vlgmr.msra.gmra.mxu0 %vm555_vm2, %v4567_v61  ;;  %1935 = vmatprep.subr.mxu1 %v1848_v19  ;;  %v1841_v61 = vld [vmem:[%s5725_s10 + $0x258] sm:$0xff]  ;;  %v1807_v19 = vld [vmem:[%s5725_s10 + $0x148] sm:$0xff] }
 0x38f   : > { %3575 = vmatprep.mubr.msk.f32.mxu0 %vm3753_vm0, %v3752_v0  ;;  %1936 = vmatpush2.msra.mxu1 %v1847_v21  ;;  %v1852_v21 = vld [vmem:[%s5725_s10 + $0x2b0] sm:$0xff] }
 0x390   : > { %1937 = vmatprep.subr.mxu1 %v1845_v22  ;;  %1994 = vmatprep.subr.mxu0 %v1884_v23  ;;  %v1804_v22 = vld [vmem:[%s5725_s10 + $0x130] sm:$0xff] }
 0x391   : > { %1938 = vmatpush2.msra.mxu1 %v1844_v24  ;;  %1995 = vmatpush1.msra.mxu0 %v1883_v25  ;;  %v1849_v24 = vld [vmem:[%s5725_s10 + $0x298] sm:$0xff] }
 0x392   : > { %3576 = vmatmul.mubr.msk.f32.gmra.mxu0 %vm555_vm2, %v4587_v5  ;;  %1939 = vmatprep.subr.mxu1 %v1842_v26  ;;  %v1835_v5 = vld [vmem:[%s5725_s10 + $0x228] sm:$0xff]  ;;  %v1801_v25 = vld [vmem:[%s5725_s10 + $0x118] sm:$0xff] }
 0x393   : > { %3578 = vmatprep.mubr.msk.f32.mxu0 %vm3753_vm0, %v3752_v0  ;;  %1940 = vmatpush2.msra.mxu1 %v1841_v61  ;;  %v1846_v61 = vld [vmem:[%s5725_s10 + $0x280] sm:$0xff] }
 0x394   : > { %1941 = vmatprep.subr.mxu1 %v1839_v27  ;;  %1996 = vmatprep.subr.mxu0 %v1881_v34  ;;  %v1798_v27 = vld [vmem:[%s5725_s10 + $0x100] sm:$0xff]  ;;  %v1843_v34 = vld [vmem:[%s5725_s10 + $0x268] sm:$0xff] }
 0x395   : > { %1942 = vmatpush2.msra.mxu1 %v1838_v37  ;;  %1997 = vmatpush1.msra.mxu0 %v1880_v39  ;;  %v1795_v39 = vld [vmem:[%s5725_s10 + $0xe8] sm:$0xff] }
 0x396   : > { %3579 = vmatmul.mubr.msk.f32.gmra.mxu0 %vm555_vm2, %v4607_v11  ;;  %1943 = vmatprep.subr.mxu1 %v1836_v40  ;;  %v1829_v11 = vld [vmem:[%s5725_s10 + $0x1f8] sm:$0xff]  ;;  %v1840_v40 = vld [vmem:[%s5725_s10 + $0x250] sm:$0xff] }
 0x397   : > { %1944 = vmatpush2.msra.mxu1 %v1835_v5  ;;  %1998 = vmatprep.subr.mxu0 %v1878_v41  ;;  %v1792_v5 = vld [vmem:[%s5725_s10 + $0xd0] sm:$0xff]  ;;  %v1837_v41 = vld [vmem:[%s5725_s10 + $0x238] sm:$0xff] }
 0x398   : > { %1945 = vmatprep.subr.mxu1 %v1833_v42  ;;  %1999 = vmatpush1.msra.mxu0 %v1877_v43  ;;  %v1789_v42 = vld [vmem:[%s5725_s10 + $0xb8] sm:$0xff]  ;;  %v1834_v43 = vld [vmem:[%s5725_s10 + $0x220] sm:$0xff] }
 0x399   : > { %1946 = vmatpush2.msra.mxu1 %v1832_v44  ;;  %2000 = vmatprep.subr.mxu0 %v1875_v45  ;;  %v1786_v44 = vld [vmem:[%s5725_s10 + $0xa0] sm:$0xff]  ;;  %v1831_v45 = vld [vmem:[%s5725_s10 + $0x208] sm:$0xff] }
 0x39a   : > { %1947 = vmatprep.subr.mxu1 %v1830_v46  ;;  %2001 = vmatpush1.msra.mxu0 %v1874_v47  ;;  %v1783_v46 = vld [vmem:[%s5725_s10 + $0x88] sm:$0xff]  ;;  %v1828_v47 = vld [vmem:[%s5725_s10 + $0x1f0] sm:$0xff] }
 0x39b   : > { %1948 = vmatpush2.msra.mxu1 %v1829_v11  ;;  %2002 = vmatprep.subr.mxu0 %v1872_v48  ;;  %v1780_v11 = vld [vmem:[%s5725_s10 + $0x70] sm:$0xff]  ;;  %v1825_v48 = vld [vmem:[%s5725_s10 + $0x1d8] sm:$0xff] }
 0x39c   : > { %1949 = vmatprep.subr.mxu1 %v1827_v49  ;;  %2003 = vmatpush1.msra.mxu0 %v1871_v50  ;;  %v1777_v49 = vld [vmem:[%s5725_s10 + $0x58] sm:$0xff]  ;;  %v1822_v50 = vld [vmem:[%s5725_s10 + $0x1c0] sm:$0xff] }
 0x39d   : > { %1950 = vmatpush2.msra.mxu1 %v1826_v51  ;;  %2004 = vmatprep.subr.mxu0 %v1869_v52  ;;  %v1774_v51 = vld [vmem:[%s5725_s10 + $0x40] sm:$0xff]  ;;  %v1819_v52 = vld [vmem:[%s5725_s10 + $0x1a8] sm:$0xff] }
 0x39e   : > { %1951 = vmatprep.subr.mxu1 %v1824_v53  ;;  %2005 = vmatpush1.msra.mxu0 %v1868_v54  ;;  %v1771_v53 = vld [vmem:[%s5725_s10 + $0x28] sm:$0xff]  ;;  %v1816_v54 = vld [vmem:[%s5725_s10 + $0x190] sm:$0xff] }
 0x39f   : > { %1952 = vmatpush2.msra.mxu1 %v1823_v55  ;;  %2006 = vmatprep.subr.mxu0 %v1866_v56  ;;  %v1768_v55 = vld [vmem:[%s5725_s10 + $0x10] sm:$0xff]  ;;  %v1885_v56 = vld [vmem:[%s5725_s10 + $0x3b8] sm:$0xff] }
 0x3a0   : > { %1953 = vmatprep.subr.mxu1 %v1821_v57  ;;  %2042 = vmatprep.mubr.f32.mxu0 %v3752_v0  ;;  %v1882_v57 = vld [vmem:[%s5725_s10 + $0x3a0] sm:$0xff] }
 0x3a1   : > { %1954 = vmatpush2.msra.mxu1 %v1820_v58  ;;  %2007 = vmatpush1.msra.mxu0 %v1865_v60  ;;  %v1879_v58 = vld [vmem:[%s5725_s10 + $0x388] sm:$0xff]  ;;  %v1873_v60 = vld [vmem:[%s5725_s10 + $0x358] sm:$0xff] }
 0x3a2   : > { %1955 = vmatprep.subr.mxu1 %v1818_v59  ;;  %2008 = vmatprep.subr.mxu0 %v1863_v63  ;;  %v1876_v59 = vld [vmem:[%s5725_s10 + $0x370] sm:$0xff]  ;;  %v1867_v63 = vld [vmem:[%s5725_s10 + $0x328] sm:$0xff] }
 0x3a3   : > { %1956 = vmatpush2.msra.mxu1 %v1817_v62  ;;  %2009 = vmatpush1.msra.mxu0 %v1862_v2  ;;  %v1870_v62 = vld [vmem:[%s5725_s10 + $0x340] sm:$0xff] }
 0x3a4   : > { %1957 = vmatprep.subr.mxu1 %v1815_v1  ;;  %3359 = vmatprep.subr.mxu0 %v1861_v4  ;;  %v1864_v1 = vld [vmem:[%s5725_s10 + $0x310] sm:$0xff] }
 0x3a5   : > { %1958 = vmatpush2.msra.mxu1 %v1814_v3 }
 0x426   : > { %v4862_v6 = vpop.f32.mrf.mxu1 }
 0x428   : > { %v1671_v7 = vpop.f32.mrf.mxu1 }
 0x429   : > { %1959 = vmatprep.mubr.f32.mxu1 %v1671_v7 }
 0x42a   : > { %v4864_v8 = vpop.f32.mrf.mxu1  ;;  %1960 = vmatmul.mubr.f32.vlgmr.msra.gmra.mxu1 %v4862_v6 }
 0x42c   : > { %v4867_v9 = vpop.f32.mrf.mxu1 }
 0x42d   : > { %1965 = vmatprep.mubr.f32.mxu1 %v4867_v9 }
 0x42e   : > { %v4870_v10 = vpop.f32.mrf.mxu1  ;;  %1966 = vmatmul.mubr.f32.gmra.mxu1 %v4864_v8 }
 0x430   : > { %v4873_v12 = vpop.f32.mrf.mxu1 }
 0x431   : > { %1971 = vmatprep.mubr.f32.mxu1 %v4873_v12 }
 0x432   : > { %1972 = vmatmul.mubr.f32.gmra.mxu1 %v4870_v10 }
 0x433   : > { %2360 = vmatprep.mubr.f32.mxu1 %v3752_v0 }
 0x44e   : > { %v4881_v14 = vpop.f32.mrf.mxu0 }
 0x44f   : > { %3247 = vmatmul.mubr.msk.f32.vlgmr.msra.gmra.mxu0 %vm1201_vm4, %v4881_v14 }
 0x450   : > { %3360 = vmatpush3.msra.mxu0 %v1813_v13  ;;  %v3574_v17 = vpop.f32.mrf.mxu0  ;;  %2048 = vmatprep.mubr.f32.mxu0 %v3752_v0 }
 0x451   : > { %3361 = vmatprep.subr.mxu0 %v1858_v15 }
 0x452   : > { %3362 = vmatpush3.msra.mxu0 %v1810_v16  ;;  %v4898_v20 = vpop.f32.mrf.mxu0  ;;  %v2224_v16 = vld [vmem:[%s5726_s11 + $0x18] sm:$0xff] }
 0x453   : > { %3363 = vmatprep.subr.mxu0 %v1855_v18  ;;  %3248 = vmatmul.mubr.msk.f32.gmra.mxu0 %vm1201_vm4, %v4898_v20 }
 0x454   : > { %3364 = vmatpush3.msra.mxu0 %v1807_v19  ;;  %v3577_v23 = vpop.f32.mrf.mxu0  ;;  %2054 = vmatprep.mubr.f32.mxu0 %v3752_v0  ;;  %v2222_v19 = vld [vmem:[%s5726_s11 + $0x8] sm:$0xff] }
 0x455   : > { %3365 = vmatprep.subr.mxu0 %v1852_v21 }
 0x456   : > { %3366 = vmatpush3.msra.mxu0 %v1804_v22  ;;  %v4915_v26 = vpop.f32.mrf.mxu0  ;;  %v2227_v22 = vld [vmem:[%s5726_s11 + $0x30] sm:$0x3f] }
 0x457   : > { %3367 = vmatprep.subr.mxu0 %v1849_v24  ;;  %3249 = vmatmul.mubr.msk.f32.gmra.mxu0 %vm1201_vm4, %v4915_v26  ;;  %v2221_v24 = vld [vmem:[%s5726_s11] sm:$0xff] }
 0x458   : > { %3368 = vmatpush3.msra.mxu0 %v1801_v25  ;;  %v3580_v37 = vpop.f32.mrf.mxu0  ;;  %2125 = vmatprep.mubr.f32.mxu0 %v1671_v7 }
 0x459   : > { %3369 = vmatprep.subr.mxu0 %v1846_v61  ;;  %v2228_v37 = vld [vmem:[%s5726_s11 + $0x38] sm:$0x3f] }
 0x45a   : > { %3370 = vmatpush3.msra.mxu0 %v1798_v27  ;;  %v2245_v27 = vld [vmem:[%s5727_s12 + $0x30] sm:$0x3f] }
 0x45b   : > { %3371 = vmatprep.subr.mxu0 %v1843_v34 }
 0x45c   : > { %3372 = vmatpush3.msra.mxu0 %v1795_v39 }
 0x45d   : > { %3373 = vmatprep.subr.mxu0 %v1840_v40  ;;  %v2242_v40 = vld [vmem:[%s5727_s12 + $0x18] sm:$0xff] }
 0x45e   : > { %3374 = vmatpush3.msra.mxu0 %v1792_v5 }
 0x45f   : > { %3375 = vmatprep.subr.mxu0 %v1837_v41 }
 0x460   : > { %3376 = vmatpush3.msra.mxu0 %v1789_v42 }
 0x461   : > { %3377 = vmatprep.subr.mxu0 %v1834_v43 }
 0x462   : > { %3378 = vmatpush3.msra.mxu0 %v1786_v44  ;;  %v2240_v44 = vld [vmem:[%s5727_s12 + $0x8] sm:$0xff] }
 0x463   : > { %3379 = vmatprep.subr.mxu0 %v1831_v45  ;;  %v2246_v45 = vld [vmem:[%s5727_s12 + $0x38] sm:$0x3f] }
 0x464   : > { %3380 = vmatpush3.msra.mxu0 %v1783_v46  ;;  %v2239_v46 = vld [vmem:[%s5727_s12] sm:$0xff] }
 0x465   : > { %3381 = vmatprep.subr.mxu0 %v1828_v47 }
 0x466   : > { %3382 = vmatpush3.msra.mxu0 %v1780_v11 }
 0x467   : > { %3383 = vmatprep.subr.mxu0 %v1825_v48 }
 0x468   : > { %3384 = vmatpush3.msra.mxu0 %v1777_v49 }
 0x469   : > { %3385 = vmatprep.subr.mxu0 %v1822_v50 }
 0x46a   : > { %3386 = vmatpush3.msra.mxu0 %v1774_v51 }
 0x46b   : > { %3387 = vmatprep.subr.mxu0 %v1819_v52 }
 0x46c   : > { %3388 = vmatpush3.msra.mxu0 %v1771_v53 }
 0x46d   : > { %3389 = vmatprep.subr.mxu0 %v1816_v54 }
 0x46e   : > { %3390 = vmatpush3.msra.mxu0 %v1768_v55 }
 0x46f   : > { %2126 = vmatmul.mubr.f32.vlgmr.msra.gmra.mxu0 %v4862_v6  ;;  %3581 = vmatprep.subr.mxu0 %v3752_v0 }
 0x470   : > { %3582 = vmatpush3.msra.mxu0 %v1885_v56  ;;  %2130 = vmatprep.mubr.f32.mxu0 %v4867_v9 }
 0x471   : > { %3583 = vmatprep.subr.mxu0 %v3752_v0 }
 0x472   : > { %3584 = vmatpush3.msra.mxu0 %v1882_v57 }
 0x473   : > { %2131 = vmatmul.mubr.f32.gmra.mxu0 %v4864_v8  ;;  %3585 = vmatprep.subr.mxu0 %v3752_v0 }
 0x474   : > { %3586 = vmatpush3.msra.mxu0 %v1879_v58  ;;  %2135 = vmatprep.mubr.f32.mxu0 %v4873_v12 }
 0x475   : > { %3587 = vmatprep.subr.mxu0 %v3752_v0 }
 0x476   : > { %3588 = vmatpush3.msra.mxu0 %v1876_v59 }
 0x477   : > { %2136 = vmatmul.mubr.f32.gmra.mxu0 %v4870_v10  ;;  %3589 = vmatprep.subr.mxu0 %v3752_v0 }
 0x478   : > { %3590 = vmatpush3.msra.mxu0 %v1873_v60  ;;  %3597 = vmatprep.mubr.msk.f32.mxu0 %vm3753_vm0, %v3752_v0 }
 0x479   : > { %3591 = vmatprep.subr.mxu0 %v3752_v0 }
 0x47a   : > { %3592 = vmatpush3.msra.mxu0 %v1870_v62 }
 0x47b   : > { %3593 = vmatprep.subr.mxu0 %v3752_v0 }
 0x47c   : > { %3594 = vmatpush3.msra.mxu0 %v1867_v63 }
 0x47d   : > { %3595 = vmatprep.subr.mxu0 %v3752_v0 }
 0x47e   : > { %3596 = vmatpush3.msra.mxu0 %v1864_v1 }
 0x47f   : > { %3598 = vmatmul.mubr.msk.f32.vlgmr.msra.gmra.mxu0 %vm1201_vm4, %v4881_v14  ;;  %3606 = vmatprep.subr.mxu0 %v3752_v0  ;;  %v2225_v14 = vld [vmem:[%s5726_s11 + $0x20] sm:$0xff] }
 0x480   : > { %3600 = vmatprep.mubr.msk.f32.mxu0 %vm3753_vm0, %v3752_v0 }
 0x483   : > { %3601 = vmatmul.mubr.msk.f32.gmra.mxu0 %vm1201_vm4, %v4898_v20  ;;  %v2243_v20 = vld [vmem:[%s5727_s12 + $0x20] sm:$0xff] }
 0x484   : > { %3603 = vmatprep.mubr.msk.f32.mxu0 %vm3753_vm0, %v3752_v0 }
 0x487   : > { %3604 = vmatmul.mubr.msk.f32.gmra.mxu0 %vm1201_vm4, %v4915_v26 }
 0x488   : > { %3612 = vmatprep.mubr.msk.f32.mxu0 %vm3753_vm0, %v3752_v0 }
 0x4ea   : > { %v1961_v2 = vpop.f32.mrf.mxu1 }
 0x4ec   : > { %v1963_v3 = vpop.f32.mrf.mxu1 }
 0x4ee   : > { %v1967_v4 = vpop.f32.mrf.mxu1 }
 0x4f0   : > { %v1969_v7 = vpop.f32.mrf.mxu1 }
 0x4f2   : > { %v1973_v10 = vpop.f32.mrf.mxu1 }
 0x4f4   : > { %v1975_v23 = vpop.f32.mrf.mxu1 }
 0x50f   : > { %v2044_v6 = vpop.f32.mrf.mxu0 }
 0x510   : > { %v2045_v18 = vadd.f32 %v2044_v6, %v1961_v2  ;;  %v5104_v6 = vld [vmem:[%s5728_s13 + $0x8] sm:$0xff] }
 0x511   : > { %v2046_v8 = vpop.f32.mrf.mxu0 }
 0x512   : > { %v2047_v15 = vadd.f32 %v2046_v8, %v1963_v3  ;;  %v2230_v43 = vmul.f32 %v2221_v24, %v2045_v18  ;;  %v2600_v8 = vld [vmem:[%s5730_s15 + $0xa8] sm:$0xff]  ;;  %v2591_v18 = vld [vmem:[%s5730_s15 + $0x60] sm:$0xff] }
 0x513   : > { %v2050_v9 = vpop.f32.mrf.mxu0 }
 0x514   : > { %v2051_v12 = vadd.f32 %v2050_v9, %v1967_v4  ;;  %v2231_v39 = vmul.f32 %v2222_v19, %v2047_v15  ;;  %v2248_v51 = vadd.f32 %v2239_v46, %v2230_v43  ;;  %v2594_v15 = vld [vmem:[%s5730_s15 + $0x78] sm:$0xff]  ;;  %v2579_v46 = vld [vmem:[%s5730_s15] sm:$0xff] }
 0x515   : > { %v2052_v13 = vpop.f32.mrf.mxu0 }
 0x516   : > { %v2053_v17 = vadd.f32 %v2052_v13, %v1969_v7  ;;  %v2233_v61 = vmul.f32 %v2224_v16, %v2051_v12  ;;  %v2249_v49 = vadd.f32 %v2240_v44, %v2231_v39  ;;  %v2601_v7 = vld [vmem:[%s5730_s15 + $0xb0] sm:$0xff] }
 0x517   : > { %v2056_v21 = vpop.f32.mrf.mxu0  ;;  %v2597_v12 = vld [vmem:[%s5730_s15 + $0x90] sm:$0xff] }
 0x518   : > { %v2234_v25 = vmul.f32 %v2225_v14, %v2053_v17  ;;  %v2057_v26 = vadd.f32 %v2056_v21, %v1973_v10  ;;  %v2251_v48 = vadd.f32 %v2242_v40, %v2233_v61  ;;  %v2598_v10 = vld [vmem:[%s5730_s15 + $0x98] sm:$0xff]  ;;  %v5124_v13 = vld [vmem:[%s5728_s13 + $0x10] sm:$0x3f]  ;;  %v2595_v14 = vld [vmem:[%s5730_s15 + $0x80] sm:$0xff] }
 0x519   : > { %v2058_v34 = vpop.f32.mrf.mxu0  ;;  %v2592_v17 = vld [vmem:[%s5730_s15 + $0x68] sm:$0xff]  ;;  %v2582_v40 = vld [vmem:[%s5730_s15 + $0x18] sm:$0xff] }
 0x51a   : > { %v2252_v5 = vadd.f32 %v2243_v20, %v2234_v25  ;;  %v2236_v41 = vmul.f32 %v2227_v22, %v2057_v26  ;;  %v2059_v42 = vadd.f32 %v2058_v34, %v1975_v23  ;;  %v2589_v20 = vld [vmem:[%s5730_s15 + $0x50] sm:$0xff]  ;;  %v2588_v21 = vld [vmem:[%s5730_s15 + $0x48] sm:$0xff]  ;;  %v2586_v23 = vld [vmem:[%s5730_s15 + $0x38] sm:$0xff] }
 0x51b   : > { %v2585_v26 = vld [vmem:[%s5730_s15 + $0x30] sm:$0xff]  ;;  %v2583_v34 = vld [vmem:[%s5730_s15 + $0x20] sm:$0xff] }
 0x51c   : > { %v2254_v47 = vadd.f32 %v2245_v27, %v2236_v41  ;;  %v2237_v11 = vmul.f32 %v2228_v37, %v2059_v42  ;;  %3723 = vtanh.f32 %v2252_v5  ;;  %v2226_v27 = vld [vmem:[%s5726_s11 + $0x28] sm:$0xff]  ;;  %v2223_v5 = vld [vmem:[%s5726_s11 + $0x10] sm:$0xff] }
 0x51d   : > { %v2580_v42 = vld [vmem:[%s5730_s15 + $0x8] sm:$0xff] }
 0x51e   : > { %v2255_v50 = vadd.f32 %v2246_v45, %v2237_v11  ;;  %3725 = vtanh.f32 %v2254_v47  ;;  %v2244_v45 = vld [vmem:[%s5727_s12 + $0x28] sm:$0xff]  ;;  %v2229_v11 = vld [vmem:[%s5726_s11 + $0x40] sm:$0x3f] }
 0x520   : > { %3727 = vtanh.f32 %v2255_v50 }
 0x521   : > { %3729 = vtanh.f32 %v2251_v48  ;;  %v2505_v48 = vld [vmem:[%s5729_s14 + $0x170] sm:$0xff] }
 0x522   : > { %3731 = vtanh.f32 %v2249_v49 }
 0x523   : > { %3733 = vtanh.f32 %v2248_v51  ;;  %v2504_v51 = vld [vmem:[%s5729_s14 + $0x168] sm:$0xff] }
 0x529   : > { %v3724_v52 = vpop.eup %3723 }
 0x52a   : > { %v2270_v62 = vadd.f32 %v3724_v52, %v4073_v33  ;;  %v2607_v33 = vld [vmem:[%s5730_s15 + $0xe0] sm:$0xff]  ;;  %v2241_v52 = vld [vmem:[%s5727_s12 + $0x10] sm:$0xff] }
 0x52b   : > { %v3726_v53 = vpop.eup %3725 }
 0x52c   : > { %v2272_v59 = vadd.f32 %v3726_v53, %v4068_v32  ;;  %v5084_v32 = vld [vmem:[%s5728_s13] sm:$0xff] }
 0x52d   : > { %v3728_v54 = vpop.eup %3727 }
 0x52e   : > { %v3730_v55 = vpop.eup %3729  ;;  %v2273_v56 = vadd.f32 %v3728_v54, %v4064_v31  ;;  %v2247_v54 = vld [vmem:[%s5727_s12 + $0x40] sm:$0x3f] }
 0x52f   : > { %v3732_v57 = vpop.eup %3731  ;;  %v3391_v58 = vpop.f32.mrf.mxu0  ;;  %v2269_v1 = vadd.f32 %v3730_v55, %v4081_v35  ;;  %v2606_v35 = vld [vmem:[%s5730_s15 + $0xd8] sm:$0xff] }
 0x530   : > { %v3734_v60 = vpop.eup %3733  ;;  %3253 = vmatprep.subr.msk.mxu1 %vm565_vm1, %v2273_v56  ;;  %v2267_v2 = vadd.f32 %v3732_v57, %v4085_v36  ;;  %v2604_v36 = vld [vmem:[%s5730_s15 + $0xc8] sm:$0xff]  ;;  %v2502_v56 = vld [vmem:[%s5729_s14 + $0x158] sm:$0xff] }
 0x531   : > { %v3392_v63 = vpop.f32.mrf.mxu0  ;;  %3254 = vmatpush1.msk.msra.mxu1 %vm565_vm1, %v2272_v59  ;;  %v2266_v31 = vadd.f32 %v3734_v60, %v4092_v38  ;;  %v2603_v38 = vld [vmem:[%s5730_s15 + $0xc0] sm:$0xff]  ;;  %v2501_v59 = vld [vmem:[%s5729_s14 + $0x150] sm:$0xff] }
 0x532   : > { %2324 = vmatprep.subr.mxu1 %v2270_v62  ;;  %v3393_v24 = vadd.f32 %v3392_v63, %v3391_v58  ;;  %v5193_v58 = vld [vmem:[%s3883_s30] sm:$0xff] }
 0x533   : > { %v3394_v3 = vpop.f32.mrf.mxu0  ;;  %2325 = vmatpush1.msra.mxu1 %v2269_v1  ;;  %v2499_v60 = vld [vmem:[%s5729_s14 + $0x140] sm:$0xff]  ;;  %v2498_v1 = vld [vmem:[%s5729_s14 + $0x138] sm:$0xff] }
 0x534   : > { %2326 = vmatprep.subr.mxu1 %v2267_v2  ;;  %v2496_v2 = vld [vmem:[%s5729_s14 + $0x128] sm:$0xff] }
 0x535   : > { %v3395_v4 = vpop.f32.mrf.mxu0  ;;  %2327 = vmatpush1.msra.mxu1 %v2266_v31  ;;  %v5214_v31 = vld [vmem:[%s3883_s30 + $0x8] sm:$0xff] }
 0x536   : > { %3255 = vmatmul.mubr.msk.f32.vlgmr.msra.gmra.mxu1 %vm555_vm2, %v5084_v32  ;;  %2629 = vmatprep.subr.mxu1 %v2607_v33  ;;  %v3396_v25 = vadd.f32 %v3395_v4, %v3394_v3  ;;  %v2495_v3 = vld [vmem:[%s5729_s14 + $0x120] sm:$0xff]  ;;  %v2493_v33 = vld [vmem:[%s5729_s14 + $0x110] sm:$0xff]  ;;  %v2490_v4 = vld [vmem:[%s5729_s14 + $0xf8] sm:$0xff] }
 0x537   : > { %2366 = vmatprep.mubr.f32.mxu1 %v3752_v0  ;;  %2630 = vmatpush1.msra.mxu1 %v2606_v35  ;;  %v3397_v9 = vpop.f32.mrf.mxu0  ;;  %v2492_v35 = vld [vmem:[%s5729_s14 + $0x108] sm:$0xff] }
 0x538   : > { %2631 = vmatprep.subr.mxu1 %v2604_v36  ;;  %v2489_v36 = vld [vmem:[%s5729_s14 + $0xf0] sm:$0xff] }
 0x539   : > { %2632 = vmatpush1.msra.mxu1 %v2603_v38  ;;  %v3398_v16 = vpop.f32.mrf.mxu0  ;;  %v5232_v38 = vld [vmem:[%s3883_s30 + $0x10] sm:$0x3f] }
 0x53a   : > { %3256 = vmatmul.mubr.msk.f32.gmra.mxu1 %vm555_vm2, %v5104_v6  ;;  %2633 = vmatprep.subr.mxu1 %v2601_v7  ;;  %v3399_v43 = vadd.f32 %v3398_v16, %v3397_v9  ;;  %v2487_v7 = vld [vmem:[%s5729_s14 + $0xe0] sm:$0xff]  ;;  %v2484_v9 = vld [vmem:[%s5729_s14 + $0xc8] sm:$0xff] }
 0x53b   : > { %2372 = vmatprep.mubr.f32.mxu1 %v3752_v0  ;;  %2634 = vmatpush1.msra.mxu1 %v2600_v8  ;;  %v2486_v8 = vld [vmem:[%s5729_s14 + $0xd8] sm:$0xff] }
 0x53c   : > { %2635 = vmatprep.subr.mxu1 %v2598_v10  ;;  %v2483_v10 = vld [vmem:[%s5729_s14 + $0xc0] sm:$0xff] }
 0x53d   : > { %2636 = vmatpush1.msra.mxu1 %v2597_v12  ;;  %v2481_v12 = vld [vmem:[%s5729_s14 + $0xb0] sm:$0xff] }
 0x53e   : > { %3257 = vmatmul.mubr.msk.f32.gmra.mxu1 %vm555_vm2, %v5124_v13  ;;  %2637 = vmatprep.subr.mxu1 %v2595_v14  ;;  %v2480_v14 = vld [vmem:[%s5729_s14 + $0xa8] sm:$0xff] }
 0x53f   : > { %v2207_v19 = vpop.f32.mrf.mxu0  ;;  %2638 = vmatpush1.msra.mxu1 %v2594_v15  ;;  %2681 = vmatprep.mubr.f32.mxu1 %v3752_v0  ;;  %v2478_v15 = vld [vmem:[%s5729_s14 + $0x98] sm:$0xff] }
 0x540   : > { %2639 = vmatprep.subr.mxu1 %v2592_v17  ;;  %v2208_v37 = vadd.f32 %v3393_v24, %v2207_v19  ;;  %v2477_v17 = vld [vmem:[%s5729_s14 + $0x90] sm:$0xff]  ;;  %v2475_v19 = vld [vmem:[%s5729_s14 + $0x80] sm:$0xff] }
 0x541   : > { %v3599_v22 = vpop.f32.mrf.mxu0  ;;  %2640 = vmatpush1.msra.mxu1 %v2591_v18 }
 0x542   : > { %2641 = vmatprep.subr.mxu1 %v2589_v20  ;;  %v2232_v49 = vmul.f32 %v2223_v5, %v2208_v37  ;;  %v2462_v37 = vld [vmem:[%s5729_s14 + $0x18] sm:$0xff]  ;;  %v2605_v5 = vld [vmem:[%s5730_s15 + $0xd0] sm:$0xff] }
 0x543   : > { %v2212_v61 = vpop.f32.mrf.mxu0  ;;  %2642 = vmatpush1.msra.mxu1 %v2588_v21  ;;  %v2474_v21 = vld [vmem:[%s5729_s14 + $0x78] sm:$0xff] }
 0x544   : > { %v2213_v39 = vadd.f32 %v3396_v25, %v2212_v61  ;;  %2643 = vmatprep.subr.mxu1 %v2586_v23  ;;  %v2250_v62 = vadd.f32 %v2241_v52, %v2232_v49  ;;  %v2472_v23 = vld [vmem:[%s5729_s14 + $0x68] sm:$0xff]  ;;  %v2469_v25 = vld [vmem:[%s5729_s14 + $0x50] sm:$0xff]  ;;  %v2466_v61 = vld [vmem:[%s5729_s14 + $0x38] sm:$0xff] }
 0x545   : > { %v3602_v41 = vpop.f32.mrf.mxu0  ;;  %2644 = vmatpush1.msra.mxu1 %v2585_v26  ;;  %v2540_v49 = vld [vmem:[%s5729_s14 + $0x288] sm:$0xff]  ;;  %v2537_v52 = vld [vmem:[%s5729_s14 + $0x270] sm:$0xff] }
 0x546   : > { %v2235_v44 = vmul.f32 %v2226_v27, %v2213_v39  ;;  %2645 = vmatprep.subr.mxu1 %v2583_v34  ;;  %v2465_v27 = vld [vmem:[%s5729_s14 + $0x30] sm:$0xff]  ;;  %v2608_v34 = vld [vmem:[%s5730_s15 + $0xe8] sm:$0xff]  ;;  %v2459_v39 = vld [vmem:[%s5729_s14] sm:$0xff] }
 0x547   : > { %v2217_v47 = vpop.f32.mrf.mxu0  ;;  %2646 = vmatpush1.msra.mxu1 %v2582_v40  ;;  %v2553_v40 = vld [vmem:[%s5729_s14 + $0x2f0] sm:$0xff]  ;;  %v2552_v41 = vld [vmem:[%s5729_s14 + $0x2e8] sm:$0xff] }
 0x548   : > { %v2218_v50 = vadd.f32 %v3399_v43, %v2217_v47  ;;  %2647 = vmatprep.subr.mxu1 %v2580_v42  ;;  %v2253_v53 = vadd.f32 %v2244_v45, %v2235_v44  ;;  %v2549_v42 = vld [vmem:[%s5729_s14 + $0x2d0] sm:$0xff]  ;;  %v2602_v43 = vld [vmem:[%s5730_s15 + $0xb8] sm:$0xff]  ;;  %v2547_v44 = vld [vmem:[%s5729_s14 + $0x2c0] sm:$0xff] }
 0x549   : > { %v3605_v55 = vpop.f32.mrf.mxu0  ;;  %2648 = vmatpush1.msra.mxu1 %v2579_v46  ;;  %v2546_v45 = vld [vmem:[%s5729_s14 + $0x2b8] sm:$0xff]  ;;  %v2599_v46 = vld [vmem:[%s5730_s15 + $0xa0] sm:$0xff] }
 0x54a   : > { %v2238_v57 = vmul.f32 %v2229_v11, %v2218_v50  ;;  %2789 = vmatprep.subr.mxu1 %v2505_v48  ;;  %3262 = vmatmul.mubr.msk.f32.vlgmr.msra.gmra.mxu1 %vm679_vm3, %v5193_v58  ;;  %3735 = vtanh.f32 %v2253_v53  ;;  %v2543_v47 = vld [vmem:[%s5729_s14 + $0x2a0] sm:$0xff]  ;;  %v2596_v11 = vld [vmem:[%s5730_s15 + $0x88] sm:$0xff]  ;;  %v2541_v48 = vld [vmem:[%s5729_s14 + $0x290] sm:$0xff] }
 0x54b   : > { %2790 = vmatpush1.msra.mxu1 %v2504_v51  ;;  %2687 = vmatprep.mubr.f32.mxu1 %v3752_v0  ;;  %v2593_v50 = vld [vmem:[%s5730_s15 + $0x70] sm:$0xff]  ;;  %v2538_v51 = vld [vmem:[%s5729_s14 + $0x278] sm:$0xff] }
 0x54c   : > { %v2256_v63 = vadd.f32 %v2247_v54, %v2238_v57  ;;  %2791 = vmatprep.subr.mxu1 %v2502_v56  ;;  %v2590_v53 = vld [vmem:[%s5730_s15 + $0x58] sm:$0xff]  ;;  %v2535_v54 = vld [vmem:[%s5729_s14 + $0x260] sm:$0xff]  ;;  %v2532_v57 = vld [vmem:[%s5729_s14 + $0x248] sm:$0xff] }
 0x54d   : > { %2792 = vmatpush1.msra.mxu1 %v2501_v59  ;;  %v2534_v55 = vld [vmem:[%s5729_s14 + $0x258] sm:$0xff]  ;;  %v2587_v56 = vld [vmem:[%s5730_s15 + $0x40] sm:$0xff] }
 0x54e   : > { %3737 = vtanh.f32 %v2256_v63  ;;  %2793 = vmatprep.subr.mxu1 %v2499_v60  ;;  %3263 = vmatmul.mubr.msk.f32.gmra.mxu1 %vm679_vm3, %v5214_v31  ;;  %v2531_v59 = vld [vmem:[%s5729_s14 + $0x240] sm:$0xff]  ;;  %v2584_v60 = vld [vmem:[%s5730_s15 + $0x28] sm:$0xff] }
 0x54f   : > { %2794 = vmatpush1.msra.mxu1 %v2498_v1  ;;  %2693 = vmatprep.mubr.f32.mxu1 %v3752_v0  ;;  %3739 = vtanh.f32 %v2250_v62  ;;  %v2529_v62 = vld [vmem:[%s5729_s14 + $0x230] sm:$0xff]  ;;  %v2528_v63 = vld [vmem:[%s5729_s14 + $0x228] sm:$0xff] }
 0x550   : > { %2795 = vmatprep.subr.mxu1 %v2496_v2  ;;  %v2581_v1 = vld [vmem:[%s5730_s15 + $0x10] sm:$0xff]  ;;  %v2526_v2 = vld [vmem:[%s5729_s14 + $0x218] sm:$0xff] }
 0x551   : > { %2796 = vmatpush1.msra.mxu1 %v2495_v3  ;;  %v2525_v3 = vld [vmem:[%s5729_s14 + $0x210] sm:$0xff] }
 0x552   : > { %2797 = vmatprep.subr.mxu1 %v2493_v33  ;;  %3264 = vmatmul.mubr.msk.f32.gmra.mxu1 %vm679_vm3, %v5232_v38  ;;  %v2577_v33 = vld [vmem:[%s5729_s14 + $0x3b0] sm:$0xff] }
 0x553   : > { %2798 = vmatpush1.msra.mxu1 %v2492_v35  ;;  %v2523_v35 = vld [vmem:[%s5729_s14 + $0x200] sm:$0xff] }
 0x554   : > { %2799 = vmatprep.subr.mxu1 %v2490_v4  ;;  %v2522_v4 = vld [vmem:[%s5729_s14 + $0x1f8] sm:$0xff] }
 0x555   : > { %2800 = vmatpush1.msra.mxu1 %v2489_v36  ;;  %v2576_v36 = vld [vmem:[%s5729_s14 + $0x3a8] sm:$0xff] }
 0x556   : > { %2801 = vmatprep.subr.mxu1 %v2487_v7  ;;  %v2520_v7 = vld [vmem:[%s5729_s14 + $0x1e8] sm:$0xff] }
 0x557   : > { %2802 = vmatpush1.msra.mxu1 %v2486_v8  ;;  %v3736_v16 = vpop.eup %3735  ;;  %v2574_v8 = vld [vmem:[%s5729_s14 + $0x398] sm:$0xff] }
 0x558   : > { %2803 = vmatprep.subr.mxu1 %v2484_v9  ;;  %v2271_v24 = vadd.f32 %v3736_v16, %v4060_v29  ;;  %v2468_v29 = vld [vmem:[%s5729_s14 + $0x48] sm:$0xff]  ;;  %v2519_v9 = vld [vmem:[%s5729_s14 + $0x1e0] sm:$0xff]  ;;  %v2514_v16 = vld [vmem:[%s5729_s14 + $0x1b8] sm:$0xff] }
 0x559   : > { %2804 = vmatpush1.msra.mxu1 %v2483_v10  ;;  %v2573_v10 = vld [vmem:[%s5729_s14 + $0x390] sm:$0xff] }
 0x55a   : > { %2805 = vmatprep.subr.mxu1 %v2481_v12  ;;  %v2517_v12 = vld [vmem:[%s5729_s14 + $0x1d0] sm:$0xff] }
 0x55b   : > { %v3738_v18 = vpop.eup %3737  ;;  %2806 = vmatpush1.msra.mxu1 %v2480_v14  ;;  %v2571_v14 = vld [vmem:[%s5729_s14 + $0x380] sm:$0xff] }
 0x55c   : > { %v2274_v20 = vadd.f32 %v3738_v18, %v4062_v30  ;;  %2807 = vmatprep.subr.mxu1 %v2478_v15  ;;  %v3740_v22 = vpop.eup %3739  ;;  %v2471_v30 = vld [vmem:[%s5729_s14 + $0x60] sm:$0xff]  ;;  %v2516_v15 = vld [vmem:[%s5729_s14 + $0x1c8] sm:$0xff]  ;;  %v2513_v18 = vld [vmem:[%s5729_s14 + $0x1b0] sm:$0xff] }
 0x55d   : > { %2808 = vmatpush1.msra.mxu1 %v2477_v17  ;;  %v2268_v26 = vadd.f32 %v3740_v22, %v4058_v28  ;;  %v2463_v28 = vld [vmem:[%s5729_s14 + $0x20] sm:$0xff]  ;;  %v2568_v17 = vld [vmem:[%s5729_s14 + $0x368] sm:$0xff]  ;;  %v2565_v22 = vld [vmem:[%s5729_s14 + $0x350] sm:$0xff] }
 0x55e   : > { %3607 = vmatpush3.msk.msra.mxu0 %vm565_vm1, %v2274_v20  ;;  %2809 = vmatprep.subr.mxu1 %v2475_v19  ;;  %v2567_v19 = vld [vmem:[%s5729_s14 + $0x360] sm:$0xff] }
 0x55f   : > { %3608 = vmatprep.subr.mxu0 %v3752_v0  ;;  %2810 = vmatpush1.msra.mxu1 %v2474_v21  ;;  %v2511_v20 = vld [vmem:[%s5729_s14 + $0x1a0] sm:$0xff]  ;;  %v2510_v21 = vld [vmem:[%s5729_s14 + $0x198] sm:$0xff] }
 0x560   : > { %3609 = vmatpush3.msra.mxu0 %v2271_v24  ;;  %2811 = vmatprep.subr.mxu1 %v2472_v23  ;;  %v2508_v23 = vld [vmem:[%s5729_s14 + $0x188] sm:$0xff]  ;;  %v2507_v24 = vld [vmem:[%s5729_s14 + $0x180] sm:$0xff] }
 0x561   : > { %3610 = vmatprep.subr.mxu0 %v3752_v0  ;;  %2812 = vmatpush1.msra.mxu1 %v2471_v30  ;;  %v2564_v30 = vld [vmem:[%s5729_s14 + $0x348] sm:$0xff] }
 0x562   : > { %3611 = vmatpush3.msra.mxu0 %v2268_v26  ;;  %2813 = vmatprep.subr.mxu1 %v2469_v25  ;;  %v2562_v25 = vld [vmem:[%s5729_s14 + $0x338] sm:$0xff]  ;;  %v2561_v26 = vld [vmem:[%s5729_s14 + $0x330] sm:$0xff] }
 0x563   : > { %3613 = vmatmul.mubr.msk.f32.vlgmr.msra.gmra.mxu0 %vm555_vm2, %v5084_v32  ;;  %2814 = vmatpush1.msra.mxu1 %v2468_v29  ;;  %v2460_v32 = vld [vmem:[%s5729_s14 + $0x8] sm:$0xff]  ;;  %v2559_v29 = vld [vmem:[%s5729_s14 + $0x320] sm:$0xff] }
 0x564   : > { %3615 = vmatprep.mubr.msk.f32.mxu0 %vm3753_vm0, %v3752_v0  ;;  %2815 = vmatprep.subr.mxu1 %v2466_v61  ;;  %v2558_v61 = vld [vmem:[%s5729_s14 + $0x318] sm:$0xff] }
 0x565   : > { %2816 = vmatpush1.msra.mxu1 %v2465_v27  ;;  %3621 = vmatprep.subr.mxu0 %v3752_v0  ;;  %v2555_v27 = vld [vmem:[%s5729_s14 + $0x300] sm:$0xff] }
 0x566   : > { %2817 = vmatprep.subr.mxu1 %v2463_v28  ;;  %3622 = vmatpush3.msra.mxu0 %v2608_v34  ;;  %v2554_v28 = vld [vmem:[%s5729_s14 + $0x2f8] sm:$0xff] }
 0x567   : > { %3616 = vmatmul.mubr.msk.f32.gmra.mxu0 %vm555_vm2, %v5104_v6  ;;  %2818 = vmatpush1.msra.mxu1 %v2462_v37  ;;  %v2550_v6 = vld [vmem:[%s5729_s14 + $0x2d8] sm:$0xff] }
 0x568   : > { %3618 = vmatprep.mubr.msk.f32.mxu0 %vm3753_vm0, %v3752_v0  ;;  %2819 = vmatprep.subr.mxu1 %v2460_v32 }
 0x569   : > { %2820 = vmatpush1.msra.mxu1 %v2459_v39  ;;  %3623 = vmatprep.subr.mxu0 %v3752_v0 }
 0x56a   : > { %2821 = vmatprep.subr.mxu1 %v2553_v40  ;;  %3624 = vmatpush3.msra.mxu0 %v2605_v5  ;;  %v2506_v5 = vld [vmem:[%s5729_s14 + $0x178] sm:$0xff] }
 0x56b   : > { %3619 = vmatmul.mubr.msk.f32.gmra.mxu0 %vm555_vm2, %v5124_v13  ;;  %2822 = vmatpush2.msra.mxu1 %v2552_v41  ;;  %v2544_v13 = vld [vmem:[%s5729_s14 + $0x2a8] sm:$0xff] }
 0x56c   : > { %2823 = vmatprep.subr.mxu1 %v2550_v6  ;;  %3625 = vmatprep.subr.mxu0 %v3752_v0  ;;  %v2551_v6 = vld [vmem:[%s5729_s14 + $0x2e0] sm:$0xff] }
 0x56d   : > { %2824 = vmatpush2.msra.mxu1 %v2549_v42  ;;  %3626 = vmatpush3.msra.mxu0 %v2602_v43  ;;  %v2503_v42 = vld [vmem:[%s5729_s14 + $0x160] sm:$0xff]  ;;  %v2548_v43 = vld [vmem:[%s5729_s14 + $0x2c8] sm:$0xff] }
 0x56e   : > { %2825 = vmatprep.subr.mxu1 %v2547_v44  ;;  %3627 = vmatprep.subr.mxu0 %v3752_v0 }
 0x56f   : > { %2826 = vmatpush2.msra.mxu1 %v2546_v45  ;;  %3628 = vmatpush3.msra.mxu0 %v2599_v46  ;;  %v2500_v45 = vld [vmem:[%s5729_s14 + $0x148] sm:$0xff]  ;;  %v2545_v46 = vld [vmem:[%s5729_s14 + $0x2b0] sm:$0xff] }
 0x570   : > { %2827 = vmatprep.subr.mxu1 %v2544_v13  ;;  %3629 = vmatprep.subr.mxu0 %v3752_v0 }
 0x571   : > { %2828 = vmatpush2.msra.mxu1 %v2543_v47  ;;  %3630 = vmatpush3.msra.mxu0 %v2596_v11  ;;  %v2497_v47 = vld [vmem:[%s5729_s14 + $0x130] sm:$0xff]  ;;  %v2542_v11 = vld [vmem:[%s5729_s14 + $0x298] sm:$0xff] }
 0x572   : > { %2829 = vmatprep.subr.mxu1 %v2541_v48  ;;  %3631 = vmatprep.subr.mxu0 %v3752_v0 }
 0x573   : > { %2830 = vmatpush2.msra.mxu1 %v2540_v49  ;;  %3632 = vmatpush3.msra.mxu0 %v2593_v50  ;;  %v2494_v49 = vld [vmem:[%s5729_s14 + $0x118] sm:$0xff]  ;;  %v2539_v50 = vld [vmem:[%s5729_s14 + $0x280] sm:$0xff] }
 0x574   : > { %2831 = vmatprep.subr.mxu1 %v2538_v51  ;;  %3633 = vmatprep.subr.mxu0 %v3752_v0 }
 0x575   : > { %2832 = vmatpush2.msra.mxu1 %v2537_v52  ;;  %3634 = vmatpush3.msra.mxu0 %v2590_v53  ;;  %v2491_v52 = vld [vmem:[%s5729_s14 + $0x100] sm:$0xff]  ;;  %v2536_v53 = vld [vmem:[%s5729_s14 + $0x268] sm:$0xff] }
 0x576   : > { %2833 = vmatprep.subr.mxu1 %v2535_v54  ;;  %3635 = vmatprep.subr.mxu0 %v3752_v0 }
 0x577   : > { %2834 = vmatpush2.msra.mxu1 %v2534_v55  ;;  %3636 = vmatpush3.msra.mxu0 %v2587_v56  ;;  %v2488_v55 = vld [vmem:[%s5729_s14 + $0xe8] sm:$0xff]  ;;  %v2533_v56 = vld [vmem:[%s5729_s14 + $0x250] sm:$0xff] }
 0x578   : > { %2835 = vmatprep.subr.mxu1 %v2532_v57  ;;  %3637 = vmatprep.subr.mxu0 %v3752_v0  ;;  %v2485_v57 = vld [vmem:[%s5729_s14 + $0xd0] sm:$0xff] }
 0x579   : > { %2836 = vmatpush2.msra.mxu1 %v2531_v59  ;;  %3638 = vmatpush3.msra.mxu0 %v2584_v60  ;;  %v2530_v59 = vld [vmem:[%s5729_s14 + $0x238] sm:$0xff] }
 0x57a   : > { %2837 = vmatprep.subr.mxu1 %v2529_v62  ;;  %3639 = vmatprep.subr.mxu0 %v3752_v0  ;;  %v2482_v60 = vld [vmem:[%s5729_s14 + $0xb8] sm:$0xff]  ;;  %v2527_v62 = vld [vmem:[%s5729_s14 + $0x220] sm:$0xff] }
 0x57b   : > { %2838 = vmatpush2.msra.mxu1 %v2528_v63  ;;  %3640 = vmatpush3.msra.mxu0 %v2581_v1  ;;  %v2479_v63 = vld [vmem:[%s5729_s14 + $0xa0] sm:$0xff]  ;;  %v2524_v1 = vld [vmem:[%s5729_s14 + $0x208] sm:$0xff] }
 0x57c   : > { %2839 = vmatprep.subr.mxu1 %v2526_v2  ;;  %3641 = vmatprep.mubr.msk.f32.mxu0 %vm3753_vm0, %v3752_v0  ;;  %v2476_v2 = vld [vmem:[%s5729_s14 + $0x88] sm:$0xff] }
 0x57d   : > { %2840 = vmatpush2.msra.mxu1 %v2525_v3  ;;  %2888 = vmatprep.subr.mxu0 %v2577_v33  ;;  %v2521_v3 = vld [vmem:[%s5729_s14 + $0x1f0] sm:$0xff] }
 0x57e   : > { %2841 = vmatprep.subr.mxu1 %v2523_v35  ;;  %3642 = vmatmul.mubr.msk.f32.vlgmr.msra.gmra.mxu0 %vm679_vm3, %v5193_v58  ;;  %v2570_v58 = vld [vmem:[%s5729_s14 + $0x378] sm:$0xff]  ;;  %v2473_v33 = vld [vmem:[%s5729_s14 + $0x70] sm:$0xff] }
 0x57f   : > { %2842 = vmatpush2.msra.mxu1 %v2522_v4  ;;  %2889 = vmatpush1.msra.mxu0 %v2576_v36  ;;  %v2518_v35 = vld [vmem:[%s5729_s14 + $0x1d8] sm:$0xff]  ;;  %v2515_v36 = vld [vmem:[%s5729_s14 + $0x1c0] sm:$0xff] }
 0x580   : > { %2843 = vmatprep.subr.mxu1 %v2520_v7  ;;  %2890 = vmatprep.subr.mxu0 %v2574_v8  ;;  %v2470_v4 = vld [vmem:[%s5729_s14 + $0x58] sm:$0xff]  ;;  %v2467_v7 = vld [vmem:[%s5729_s14 + $0x40] sm:$0xff]  ;;  %v2512_v8 = vld [vmem:[%s5729_s14 + $0x1a8] sm:$0xff] }
 0x581   : > { %2844 = vmatpush2.msra.mxu1 %v2519_v9  ;;  %2891 = vmatpush1.msra.mxu0 %v2573_v10  ;;  %v2464_v9 = vld [vmem:[%s5729_s14 + $0x28] sm:$0xff] }
 0x582   : > { %2845 = vmatprep.subr.mxu1 %v2517_v12  ;;  %2892 = vmatprep.subr.mxu0 %v2571_v14  ;;  %v2509_v12 = vld [vmem:[%s5729_s14 + $0x190] sm:$0xff] }
 0x583   : > { %2846 = vmatpush2.msra.mxu1 %v2516_v15  ;;  %2893 = vmatpush1.msra.mxu0 %v2570_v58  ;;  %v2461_v14 = vld [vmem:[%s5729_s14 + $0x10] sm:$0xff]  ;;  %v2578_v58 = vld [vmem:[%s5729_s14 + $0x3b8] sm:$0xff] }
 0x584   : > { %2847 = vmatprep.subr.mxu1 %v2514_v16  ;;  %2894 = vmatprep.subr.mxu0 %v2568_v17  ;;  %v2575_v16 = vld [vmem:[%s5729_s14 + $0x3a0] sm:$0xff]  ;;  %v2572_v17 = vld [vmem:[%s5729_s14 + $0x388] sm:$0xff] }
 0x585   : > { %2848 = vmatpush2.msra.mxu1 %v2513_v18  ;;  %2895 = vmatpush1.msra.mxu0 %v2567_v19  ;;  %v2569_v18 = vld [vmem:[%s5729_s14 + $0x370] sm:$0xff] }
 0x586   : > { %2849 = vmatprep.subr.mxu1 %v2511_v20  ;;  %3644 = vmatprep.mubr.msk.f32.mxu0 %vm3753_vm0, %v3752_v0  ;;  %v2566_v20 = vld [vmem:[%s5729_s14 + $0x358] sm:$0xff] }
 0x587   : > { %2850 = vmatpush2.msra.mxu1 %v2510_v21  ;;  %2896 = vmatprep.subr.mxu0 %v2565_v22  ;;  %v2563_v22 = vld [vmem:[%s5729_s14 + $0x340] sm:$0xff] }
 0x588   : > { %2851 = vmatprep.subr.mxu1 %v2508_v23  ;;  %3645 = vmatmul.mubr.msk.f32.gmra.mxu0 %vm679_vm3, %v5214_v31  ;;  %v2556_v31 = vld [vmem:[%s5729_s14 + $0x308] sm:$0xff] }
 0x589   : > { %2852 = vmatpush2.msra.mxu1 %v2507_v24  ;;  %2897 = vmatpush1.msra.mxu0 %v2564_v30  ;;  %v2560_v24 = vld [vmem:[%s5729_s14 + $0x328] sm:$0xff] }
 0x58a   : > { %2898 = vmatprep.subr.mxu0 %v2562_v25  ;;  %3647 = vmatprep.mubr.msk.f32.mxu0 %vm3753_vm0, %v3752_v0  ;;  %v2557_v25 = vld [vmem:[%s5729_s14 + $0x310] sm:$0xff] }
 0x58b   : > { %2899 = vmatpush1.msra.mxu0 %v2561_v26 }
 0x58c   : > { %2900 = vmatprep.subr.mxu0 %v2559_v29  ;;  %3648 = vmatmul.mubr.msk.f32.gmra.mxu0 %vm679_vm3, %v5232_v38 }
 0x58d   : > { %2901 = vmatpush1.msra.mxu0 %v2558_v61  ;;  %2936 = vmatprep.mubr.f32.mxu0 %v3752_v0 }
 0x58e   : > { %2902 = vmatprep.subr.mxu0 %v2556_v31 }
 0x58f   : > { %2903 = vmatpush1.msra.mxu0 %v2555_v27 }
 0x590   : > { %3430 = vmatprep.subr.mxu0 %v2554_v28 }
 0x5f6   : > { %v5512_v34 = vpop.f32.mrf.mxu1 }
 0x5f8   : > { %v2364_v37 = vpop.f32.mrf.mxu1 }
 0x5f9   : > { %2853 = vmatprep.mubr.f32.mxu1 %v2364_v37 }
 0x5fa   : > { %2854 = vmatmul.mubr.f32.vlgmr.msra.gmra.mxu1 %v5512_v34  ;;  %v5515_v38 = vpop.f32.mrf.mxu1 }
 0x5fc   : > { %v5517_v32 = vpop.f32.mrf.mxu1 }
 0x5fd   : > { %2859 = vmatprep.mubr.f32.mxu1 %v5517_v32 }
 0x5fe   : > { %v5520_v39 = vpop.f32.mrf.mxu1  ;;  %2860 = vmatmul.mubr.f32.gmra.mxu1 %v5515_v38 }
 0x600   : > { %v5523_v40 = vpop.f32.mrf.mxu1 }
 0x601   : > { %2865 = vmatprep.mubr.f32.mxu1 %v5523_v40 }
 0x602   : > { %2866 = vmatmul.mubr.f32.gmra.mxu1 %v5520_v39 }
 0x60a   : > { %v2683_v26 = vpop.f32.mrf.mxu1 }
 0x60c   : > { %v2685_v29 = vpop.f32.mrf.mxu1 }
 0x60e   : > { %v2689_v61 = vpop.f32.mrf.mxu1 }
 0x610   : > { %v2691_v31 = vpop.f32.mrf.mxu1 }
 0x612   : > { %v2695_v27 = vpop.f32.mrf.mxu1 }
 0x614   : > { %v2697_v28 = vpop.f32.mrf.mxu1 }
 0x623   : > { %v5530_v41 = vpop.f32.mrf.mxu0 }
 0x624   : > { %3268 = vmatmul.mubr.msk.f32.vlgmr.msra.gmra.mxu0 %vm1201_vm4, %v5530_v41 }
 0x625   : > { %3431 = vmatpush3.msra.mxu0 %v2506_v5  ;;  %v3614_v44 = vpop.f32.mrf.mxu0  ;;  %2942 = vmatprep.mubr.f32.mxu0 %v3752_v0 }
 0x626   : > { %3432 = vmatprep.subr.mxu0 %v2551_v6 }
 0x627   : > { %3433 = vmatpush3.msra.mxu0 %v2503_v42  ;;  %v5550_v13 = vpop.f32.mrf.mxu0 }
 0x628   : > { %3434 = vmatprep.subr.mxu0 %v2548_v43  ;;  %3269 = vmatmul.mubr.msk.f32.gmra.mxu0 %vm1201_vm4, %v5550_v13 }
 0x629   : > { %3435 = vmatpush3.msra.mxu0 %v2500_v45  ;;  %v3617_v48 = vpop.f32.mrf.mxu0  ;;  %2948 = vmatprep.mubr.f32.mxu0 %v3752_v0 }
 0x62a   : > { %3436 = vmatprep.subr.mxu0 %v2545_v46 }
 0x62b   : > { %3437 = vmatpush3.msra.mxu0 %v2497_v47  ;;  %v5567_v51 = vpop.f32.mrf.mxu0 }
 0x62c   : > { %3438 = vmatprep.subr.mxu0 %v2542_v11  ;;  %3270 = vmatmul.mubr.msk.f32.gmra.mxu0 %vm1201_vm4, %v5567_v51 }
 0x62d   : > { %3439 = vmatpush3.msra.mxu0 %v2494_v49  ;;  %3019 = vmatprep.mubr.f32.mxu0 %v2364_v37  ;;  %v3620_v54 = vpop.f32.mrf.mxu0  ;;  %v3117_v37 = vlaneseq }
 0x62e   : > { %3440 = vmatprep.subr.mxu0 %v2539_v50 }
 0x62f   : > { %3441 = vmatpush3.msra.mxu0 %v2491_v52 }
 0x630   : > { %3442 = vmatprep.subr.mxu0 %v2536_v53 }
 0x631   : > { %3443 = vmatpush3.msra.mxu0 %v2488_v55 }
 0x632   : > { %3444 = vmatprep.subr.mxu0 %v2533_v56 }
 0x633   : > { %3445 = vmatpush3.msra.mxu0 %v2485_v57 }
 0x634   : > { %3446 = vmatprep.subr.mxu0 %v2530_v59 }
 0x635   : > { %3447 = vmatpush3.msra.mxu0 %v2482_v60 }
 0x636   : > { %3448 = vmatprep.subr.mxu0 %v2527_v62 }
 0x637   : > { %3449 = vmatpush3.msra.mxu0 %v2479_v63 }
 0x638   : > { %3450 = vmatprep.subr.mxu0 %v2524_v1 }
 0x639   : > { %3451 = vmatpush3.msra.mxu0 %v2476_v2 }
 0x63a   : > { %3452 = vmatprep.subr.mxu0 %v2521_v3 }
 0x63b   : > { %3453 = vmatpush3.msra.mxu0 %v2473_v33 }
 0x63c   : > { %3454 = vmatprep.subr.mxu0 %v2518_v35 }
 0x63d   : > { %3455 = vmatpush3.msra.mxu0 %v2470_v4 }
 0x63e   : > { %3456 = vmatprep.subr.mxu0 %v2515_v36  ;;  %v5628_v10 = vpop.f32.mrf.mxu0 }
 0x63f   : > { %3457 = vmatpush3.msra.mxu0 %v2467_v7 }
 0x640   : > { %3458 = vmatprep.subr.mxu0 %v2512_v8  ;;  %v3643_v15 = vpop.f32.mrf.mxu0 }
 0x641   : > { %3459 = vmatpush3.msra.mxu0 %v2464_v9 }
 0x642   : > { %3460 = vmatprep.subr.mxu0 %v2509_v12 }
 0x643   : > { %3461 = vmatpush3.msra.mxu0 %v2461_v14 }
 0x644   : > { %3020 = vmatmul.mubr.f32.vlgmr.msra.gmra.mxu0 %v5512_v34  ;;  %3650 = vmatprep.subr.mxu0 %v3752_v0 }
 0x645   : > { %3651 = vmatpush3.msra.mxu0 %v2578_v58  ;;  %3024 = vmatprep.mubr.f32.mxu0 %v5517_v32  ;;  %v3118_v32 = vshrl.u32 %v3117_v37, 7 }
 0x646   : > { %3652 = vmatprep.subr.mxu0 %v3752_v0 }
 0x647   : > { %3653 = vmatpush3.msra.mxu0 %v2575_v16  ;;  %v3127_v14 = vsub.s32 2, %v3118_v32 }
 0x648   : > { %3025 = vmatmul.mubr.f32.gmra.mxu0 %v5515_v38  ;;  %3654 = vmatprep.subr.mxu0 %v3752_v0  ;;  %v5654_v19 = vpop.f32.mrf.mxu0 }
 0x649   : > { %3655 = vmatpush3.msra.mxu0 %v2572_v17  ;;  %3029 = vmatprep.mubr.f32.mxu0 %v5523_v40  ;;  %v3119_v40 = vsub.s32 0, %v3118_v32 }
 0x64a   : > { %3656 = vmatprep.subr.mxu0 %v3752_v0  ;;  %v3646_v21 = vpop.f32.mrf.mxu0 }
 0x64b   : > { %3657 = vmatpush3.msra.mxu0 %v2569_v18 }
 0x64c   : > { %3030 = vmatmul.mubr.f32.gmra.mxu0 %v5520_v39  ;;  %3658 = vmatprep.subr.mxu0 %v3752_v0  ;;  %v5666_v23 = vpop.f32.mrf.mxu0 }
 0x64d   : > { %3659 = vmatpush3.msra.mxu0 %v2566_v20  ;;  %3666 = vmatprep.mubr.msk.f32.mxu0 %vm3753_vm0, %v3752_v0 }
 0x64e   : > { %3660 = vmatprep.subr.mxu0 %v3752_v0  ;;  %v3649_v30 = vpop.f32.mrf.mxu0 }
 0x64f   : > { %3661 = vmatpush3.msra.mxu0 %v2563_v22 }
 0x650   : > { %3662 = vmatprep.subr.mxu0 %v3752_v0 }
 0x651   : > { %3663 = vmatpush3.msra.mxu0 %v2560_v24 }
 0x652   : > { %3664 = vmatprep.subr.mxu0 %v3752_v0 }
 0x653   : > { %3665 = vmatpush3.msra.mxu0 %v2557_v25 }
 0x654   : > { %3667 = vmatmul.mubr.msk.f32.vlgmr.msra.gmra.mxu0 %vm1201_vm4, %v5530_v41  ;;  %v3123_v41 = vsub.s32 1, %v3118_v32 }
 0x655   : > { %3669 = vmatprep.mubr.msk.f32.mxu0 %vm3753_vm0, %v3752_v0 }
 0x658   : > { %3670 = vmatmul.mubr.msk.f32.gmra.mxu0 %vm1201_vm4, %v5550_v13 }
 0x659   : > { %3672 = vmatprep.mubr.msk.f32.mxu0 %vm3753_vm0, %v3752_v0  ;;  %v3115_v0 = vld [vmem:[%s5731_s16] sm:$0x7] }
 0x65a   : > { %v3120_v42 = vrot.slane %v3115_v0, %v3119_v40  ;;  %v3124_v13 = vrot.slane %v3115_v0, %v3123_v41  ;;  %v3128_v17 = vrot.slane %v3115_v0, %v3127_v14 }
 0x65c   : > { %3673 = vmatmul.mubr.msk.f32.gmra.mxu0 %vm1201_vm4, %v5567_v51 }
 0x6ba   : > { %v2855_v34 = vpop.f32.mrf.mxu1 }
 0x6bb   : > { %v2856_v6 = vadd.f32 %v2855_v34, %v2683_v26 }
 0x6bc   : > { %v2857_v38 = vpop.f32.mrf.mxu1 }
 0x6bd   : > { %v2858_v45 = vadd.f32 %v2857_v38, %v2685_v29 }
 0x6be   : > { %v2861_v39 = vpop.f32.mrf.mxu1 }
 0x6bf   : > { %v2862_v47 = vadd.f32 %v2861_v39, %v2689_v61 }
 0x6c0   : > { %v2863_v5 = vpop.f32.mrf.mxu1 }
 0x6c1   : > { %v2864_v50 = vadd.f32 %v2863_v5, %v2691_v31 }
 0x6c2   : > { %v2867_v44 = vpop.f32.mrf.mxu1 }
 0x6c3   : > { %v2868_v55 = vadd.f32 %v2867_v44, %v2695_v27 }
 0x6c4   : > { %v2869_v52 = vpop.f32.mrf.mxu1 }
 0x6c5   : > { %v2870_v60 = vadd.f32 %v2869_v52, %v2697_v28 }
 0x6e4   : > { %v2938_v43 = vpop.f32.mrf.mxu0 }
 0x6e5   : > { %v2939_v46 = vadd.f32 %v2938_v43, %v2856_v6 }
 0x6e6   : > { %v2940_v11 = vpop.f32.mrf.mxu0 }
 0x6e7   : > { %v3132_v48 = vadd.f32 %v3120_v42, %v2939_v46  ;;  %v2941_v49 = vadd.f32 %v2940_v11, %v2858_v45 }
 0x6e8   : > { %v2944_v51 = vpop.f32.mrf.mxu0 }
 0x6e9   : > { %3141 = vst [vmem:[%s5696_s27] sm:$0xff] %v3132_v48  ;;  %v3133_v53 = vadd.f32 %v3124_v13, %v2941_v49  ;;  %v2945_v54 = vadd.f32 %v2944_v51, %v2862_v47 }
 0x6ea   : > { %v2946_v56 = vpop.f32.mrf.mxu0 }
 0x6eb   : > { %3142 = vst [vmem:[%s5696_s27 + $0x8] sm:$0xff] %v3133_v53  ;;  %v3135_v57 = vadd.f32 %v3120_v42, %v2945_v54  ;;  %v2947_v59 = vadd.f32 %v2946_v56, %v2864_v50 }
 0x6ec   : > { %v2950_v62 = vpop.f32.mrf.mxu0 }
 0x6ed   : > { %3144 = vst [vmem:[%s5696_s27 + $0x18] sm:$0xff] %v3135_v57  ;;  %v3136_v63 = vadd.f32 %v3124_v13, %v2947_v59  ;;  %v2951_v1 = vadd.f32 %v2950_v62, %v2868_v55 }
 0x6ee   : > { %v2952_v2 = vpop.f32.mrf.mxu0 }
 0x6ef   : > { %3145 = vst [vmem:[%s5696_s27 + $0x20] sm:$0xff] %v3136_v63  ;;  %v3138_v3 = vadd.f32 %v3120_v42, %v2951_v1  ;;  %v2953_v33 = vadd.f32 %v2952_v2, %v2870_v60 }
 0x6f1   : > { %3147 = vst [vmem:[%s5696_s27 + $0x30] sm:$0x3f] %v3138_v3  ;;  %v3139_v35 = vadd.f32 %v3124_v13, %v2953_v33 }
 0x6f3   : > { %3148 = vst [vmem:[%s5696_s27 + $0x38] sm:$0x3f] %v3139_v35 }
 0x704   : > { %v3462_v4 = vpop.f32.mrf.mxu0 }
 0x706   : > { %v3463_v36 = vpop.f32.mrf.mxu0 }
 0x707   : > { %v3464_v12 = vadd.f32 %v3463_v36, %v3462_v4 }
 0x708   : > { %v3465_v7 = vpop.f32.mrf.mxu0 }
 0x709   : > { %v3022_v16 = vadd.f32 %v3464_v12, %v5628_v10 }
 0x70a   : > { %v3466_v8 = vpop.f32.mrf.mxu0 }
 0x70b   : > { %v3467_v58 = vadd.f32 %v3466_v8, %v3465_v7 }
 0x70c   : > { %v3468_v9 = vpop.f32.mrf.mxu0 }
 0x70d   : > { %v3027_v30 = vadd.f32 %v3467_v58, %v5654_v19 }
 0x70e   : > { %v3469_v15 = vpop.f32.mrf.mxu0 }
 0x70f   : > { %v3470_v22 = vadd.f32 %v3469_v15, %v3468_v9 }
 0x711   : > { %v3032_v31 = vadd.f32 %v3470_v22, %v5666_v23 }
 0x714   : > { %v3101_v18 = vpop.f32.mrf.mxu0 }
 0x715   : > { %v3102_v20 = vadd.f32 %v3101_v18, %v3022_v16 }
 0x716   : > { %v3668_v21 = vpop.f32.mrf.mxu0 }
 0x717   : > { %v3134_v24 = vadd.f32 %v3128_v17, %v3102_v20 }
 0x718   : > { %v3106_v25 = vpop.f32.mrf.mxu0 }
 0x719   : > { %3143 = vst.msk [vmem:[%s5696_s27 + $0x10] sm:$0xff] %vm1201_vm4, %v3134_v24  ;;  %v3107_v26 = vadd.f32 %v3106_v25, %v3027_v30 }
 0x71a   : > { %v3671_v29 = vpop.f32.mrf.mxu0 }
 0x71b   : > { %v3137_v61 = vadd.f32 %v3128_v17, %v3107_v26 }
 0x71c   : > { %v3111_v27 = vpop.f32.mrf.mxu0 }
 0x71d   : > { %3146 = vst.msk [vmem:[%s5696_s27 + $0x28] sm:$0xff] %vm1201_vm4, %v3137_v61  ;;  %v3112_v10 = vadd.f32 %v3111_v27, %v3032_v31 }
 0x71e   : > { %v3674_v28 = vpop.f32.mrf.mxu0 }
 0x71f   : > { %v3140_v34 = vadd.f32 %v3128_v17, %v3112_v10 }
 0x721   : > { %3150 = vst.msk [vmem:[%s5696_s27 + $0x40] sm:$0x3f] %vm3149_vm5, %v3140_v34 }
 0x722 PF: > { %s27_s24 = sadd.s32 1, %s3750_s24  }
 0x723   : > { %p24_p4 = scmp.ge.s32.totalorder %s27_s24, 4  }
 0x725   :  { %26 = sbr.rel (!%p24_p4) target bundleno = 3 (0x3), region = 118 }

</bundles_post_ra>
